<compile_context>
chip_gen: v6e
topology: v6e:2x2x1
jax: 0.10.0
libtpu: 0.0.40
codegen_flags: <defaults>
</compile_context>

<pallas_src>
import math
import functools

import jax
import jax.numpy as jnp
from jax.experimental import pallas as pl
from jax.experimental.pallas import tpu as pltpu

D_MODEL = 128
NUM_HEADS = 8
D_FF = 512
LN_EPS = 1e-5


# ----------------------------------------------------------------------------- kernels

def _mha_addnorm_kernel(xq_ref, kv_ref, mask_ref,
                        wq_ref, bq_ref, wk_ref, bk_ref, wv_ref, bv_ref,
                        wo_ref, bo_ref, gamma_ref, beta_ref,
                        o_ref, attnw_ref, *, num_heads):
    """One batch element: y = LN(x + MHA(x, kv, kv, mask)); also emits attn weights."""
    f32 = jnp.float32
    x = xq_ref[0].astype(f32)        # (Sq, D)
    kv = kv_ref[0].astype(f32)       # (Sk, D)
    mask = mask_ref[0]               # (Sq, Sk)

    sq, d = x.shape
    sk = kv.shape[0]
    dk = d // num_heads

    q = jnp.dot(x, wq_ref[...], preferred_element_type=f32) + bq_ref[...]
    k = jnp.dot(kv, wk_ref[...], preferred_element_type=f32) + bk_ref[...]
    v = jnp.dot(kv, wv_ref[...], preferred_element_type=f32) + bv_ref[...]

    qh = jnp.transpose(q.reshape(sq, num_heads, dk), (1, 0, 2))   # (H, Sq, dk)
    kh = jnp.transpose(k.reshape(sk, num_heads, dk), (1, 0, 2))   # (H, Sk, dk)
    vh = jnp.transpose(v.reshape(sk, num_heads, dk), (1, 0, 2))   # (H, Sk, dk)

    scores = jnp.einsum('hqd,hkd->hqk', qh, kh, preferred_element_type=f32)
    scores = scores * jnp.float32(1.0 / math.sqrt(dk))
    scores = jnp.where(mask[None, :, :] == 0, jnp.float32(-1e9), scores)

    # numerically-stable softmax along the key axis
    m = jnp.max(scores, axis=-1, keepdims=True)
    e = jnp.exp(scores - m)
    s = jnp.sum(e, axis=-1, keepdims=True)
    w = e / s                                                     # (H, Sq, Sk)
    # TODO(synk): attention-weight dropout (training mode) is identity here (eval mode).

    ctx = jnp.einsum('hqk,hkd->hqd', w, vh, preferred_element_type=f32)   # (H, Sq, dk)
    ctx = jnp.transpose(ctx, (1, 0, 2)).reshape(sq, d)

    attn_out = jnp.dot(ctx, wo_ref[...], preferred_element_type=f32) + bo_ref[...]

    # residual (residual dropout is identity in eval mode) + LayerNorm
    y = x + attn_out
    mean = jnp.mean(y, axis=-1, keepdims=True)
    var = jnp.mean(jnp.square(y - mean), axis=-1, keepdims=True)
    yn = (y - mean) * jax.lax.rsqrt(var + LN_EPS)
    yn = yn * gamma_ref[...] + beta_ref[...]

    o_ref[0] = yn.astype(o_ref.dtype)
    attnw_ref[0] = w.astype(attnw_ref.dtype)


def _ffn_addnorm_kernel(x_ref, w1_ref, b1_ref, w2_ref, b2_ref, gamma_ref, beta_ref,
                        o_ref):
    """Row tile: y = LN(x + W2 relu(W1 x + b1) + b2)."""
    f32 = jnp.float32
    x = x_ref[...].astype(f32)                                           # (TM, D)
    h = jnp.dot(x, w1_ref[...], preferred_element_type=f32) + b1_ref[...]
    h = jnp.maximum(h, 0.0)
    # TODO(synk): FeedForward internal dropout is identity here (eval mode).
    f = jnp.dot(h, w2_ref[...], preferred_element_type=f32) + b2_ref[...]
    y = x + f
    mean = jnp.mean(y, axis=-1, keepdims=True)
    var = jnp.mean(jnp.square(y - mean), axis=-1, keepdims=True)
    yn = (y - mean) * jax.lax.rsqrt(var + LN_EPS)
    yn = yn * gamma_ref[...] + beta_ref[...]
    o_ref[...] = yn.astype(o_ref.dtype)


# ----------------------------------------------------------------------------- wrappers

def mha_add_norm(xq, kv, mask, params, *, num_heads=NUM_HEADS):
    """xq: (B, Sq, D), kv: (B, Sk, D), mask: (B, Sq, Sk). Returns (LN(xq+attn), weights)."""
    B, Sq, D = xq.shape
    Sk = kv.shape[1]
    wq, bq, wk, bk, wv, bv, wo, bo, gamma, beta = params
    kernel = functools.partial(_mha_addnorm_kernel, num_heads=num_heads)

    out_shapes = (
        jax.ShapeDtypeStruct((B, Sq, D), xq.dtype),
        jax.ShapeDtypeStruct((B, num_heads, Sq, Sk), jnp.float32),
    )

    grid_spec = pltpu.PrefetchScalarGridSpec(
        num_scalar_prefetch=0,
        grid=(B,),
        in_specs=[
            pl.BlockSpec((1, Sq, D), lambda b: (b, 0, 0)),      # query / residual
            pl.BlockSpec((1, Sk, D), lambda b: (b, 0, 0)),      # key/value source
            pl.BlockSpec((1, Sq, Sk), lambda b: (b, 0, 0)),     # mask
            pl.BlockSpec((D, D), lambda b: (0, 0)),             # W_q (resident)
            pl.BlockSpec((1, D), lambda b: (0, 0)),             # b_q
            pl.BlockSpec((D, D), lambda b: (0, 0)),             # W_k
            pl.BlockSpec((1, D), lambda b: (0, 0)),             # b_k
            pl.BlockSpec((D, D), lambda b: (0, 0)),             # W_v
            pl.BlockSpec((1, D), lambda b: (0, 0)),             # b_v
            pl.BlockSpec((D, D), lambda b: (0, 0)),             # W_o
            pl.BlockSpec((1, D), lambda b: (0, 0)),             # b_o
            pl.BlockSpec((1, D), lambda b: (0, 0)),             # LN gamma
            pl.BlockSpec((1, D), lambda b: (0, 0)),             # LN beta
        ],
        out_specs=[
            pl.BlockSpec((1, Sq, D), lambda b: (b, 0, 0)),
            pl.BlockSpec((1, num_heads, Sq, Sk), lambda b: (b, 0, 0, 0)),
        ],
    )

    return pl.pallas_call(
        kernel,
        out_shape=out_shapes,
        grid_spec=grid_spec,
        compiler_params=pltpu.CompilerParams(dimension_semantics=("parallel",)),
    )(xq, kv, mask, wq, bq, wk, bk, wv, bv, wo, bo, gamma, beta)


def _pick_row_tile(rows, max_tile=512):
    if rows <= max_tile:
        return rows
    for t in (512, 256, 128, 64, 32, 16, 8):
        if t <= max_tile and rows % t == 0:
            return t
    return rows


def ffn_add_norm(x, params):
    """x: (B, S, D). Returns LN(x + FFN(x)), row-tiled over the flattened (B*S) axis."""
    B, S, D = x.shape
    w1, b1, w2, b2, gamma, beta = params
    d_ff = w1.shape[1]
    R = B * S
    TM = _pick_row_tile(R)
    x2 = x.reshape(R, D)

    out = pl.pallas_call(
        _ffn_addnorm_kernel,
        out_shape=jax.ShapeDtypeStruct((R, D), x.dtype),
        grid_spec=pltpu.PrefetchScalarGridSpec(
            num_scalar_prefetch=0,
            grid=(R // TM,),
            in_specs=[
                pl.BlockSpec((TM, D), lambda i: (i, 0)),
                pl.BlockSpec((D, d_ff), lambda i: (0, 0)),     # W1 (resident)
                pl.BlockSpec((1, d_ff), lambda i: (0, 0)),     # b1
                pl.BlockSpec((d_ff, D), lambda i: (0, 0)),     # W2
                pl.BlockSpec((1, D), lambda i: (0, 0)),        # b2
                pl.BlockSpec((1, D), lambda i: (0, 0)),        # LN gamma
                pl.BlockSpec((1, D), lambda i: (0, 0)),        # LN beta
            ],
            out_specs=pl.BlockSpec((TM, D), lambda i: (i, 0)),
        ),
        compiler_params=pltpu.CompilerParams(dimension_semantics=("parallel",)),
    )(x2, w1, b1, w2, b2, gamma, beta)
    return out.reshape(B, S, D)


def decoder_layer_forward(x, enc_output, src_mask, tgt_mask, params):
    """Eval-mode DecoderLayer.forward. Masks are (B, Sq, Sk) with 0 = masked-out."""
    x1, self_w = mha_add_norm(x, x, tgt_mask, params["self_attn"])
    x2, cross_w = mha_add_norm(x1, enc_output, src_mask, params["cross_attn"])
    x3 = ffn_add_norm(x2, params["ffn"])
    return x3, self_w, cross_w


# ----------------------------------------------------------------------------- params / reference

def _init_linear(key, d_in, d_out, dtype=jnp.float32):
    w = jax.random.normal(key, (d_in, d_out), dtype) * (1.0 / math.sqrt(d_in))
    b = jnp.zeros((1, d_out), dtype)
    return w, b


def init_decoder_layer_params(key, d_model=D_MODEL, d_ff=D_FF, dtype=jnp.float32):
    keys = jax.random.split(key, 10)

    def mha_params(ks):
        wq, bq = _init_linear(ks[0], d_model, d_model, dtype)
        wk, bk = _init_linear(ks[1], d_model, d_model, dtype)
        wv, bv = _init_linear(ks[2], d_model, d_model, dtype)
        wo, bo = _init_linear(ks[3], d_model, d_model, dtype)
        gamma = jnp.ones((1, d_model), dtype)
        beta = jnp.zeros((1, d_model), dtype)
        return (wq, bq, wk, bk, wv, bv, wo, bo, gamma, beta)

    w1, b1 = _init_linear(keys[8], d_model, d_ff, dtype)
    w2, b2 = _init_linear(keys[9], d_ff, d_model, dtype)
    ffn = (w1, b1, w2, b2, jnp.ones((1, d_model), dtype), jnp.zeros((1, d_model), dtype))

    return {
        "self_attn": mha_params(keys[0:4]),
        "cross_attn": mha_params(keys[4:8]),
        "ffn": ffn,
    }


def _ref_mha_addnorm(xq, kv, mask, p, num_heads=NUM_HEADS):
    wq, bq, wk, bk, wv, bv, wo, bo, gamma, beta = p
    B, Sq, D = xq.shape
    Sk = kv.shape[1]
    dk = D // num_heads
    q = (xq @ wq + bq).reshape(B, Sq, num_heads, dk).transpose(0, 2, 1, 3)
    k = (kv @ wk + bk).reshape(B, Sk, num_heads, dk).transpose(0, 2, 1, 3)
    v = (kv @ wv + bv).reshape(B, Sk, num_heads, dk).transpose(0, 2, 1, 3)
    scores = jnp.einsum('bhqd,bhkd->bhqk', q, k) / math.sqrt(dk)
    scores = jnp.where(mask[:, None, :, :] == 0, -1e9, scores)
    w = jax.nn.softmax(scores, axis=-1)
    ctx = jnp.einsum('bhqk,bhkd->bhqd', w, v).transpose(0, 2, 1, 3).reshape(B, Sq, D)
    attn_out = ctx @ wo + bo
    y = xq + attn_out
    mean = y.mean(-1, keepdims=True)
    var = ((y - mean) ** 2).mean(-1, keepdims=True)
    return (y - mean) / jnp.sqrt(var + LN_EPS) * gamma + beta, w


def _ref_ffn_addnorm(x, p):
    w1, b1, w2, b2, gamma, beta = p
    f = jnp.maximum(x @ w1 + b1, 0.0) @ w2 + b2
    y = x + f
    mean = y.mean(-1, keepdims=True)
    var = ((y - mean) ** 2).mean(-1, keepdims=True)
    return (y - mean) / jnp.sqrt(var + LN_EPS) * gamma + beta


def ref_decoder_layer(x, enc_output, src_mask, tgt_mask, params):
    x1, sw = _ref_mha_addnorm(x, x, tgt_mask, params["self_attn"])
    x2, cw = _ref_mha_addnorm(x1, enc_output, src_mask, params["cross_attn"])
    x3 = _ref_ffn_addnorm(x2, params["ffn"])
    return x3, sw, cw


# ----------------------------------------------------------------------------- demo

if __name__ == "__main__":
    B, S_dec, S_enc = 2, 8, 8

    key = jax.random.PRNGKey(0)
    k_x, k_enc, k_p = jax.random.split(key, 3)
    x = jax.random.normal(k_x, (B, S_dec, D_MODEL), jnp.float32)
    enc_output = jax.random.normal(k_enc, (B, S_enc, D_MODEL), jnp.float32)

    # causal target mask, all-ones source mask (0 = masked, matching masked_fill(mask == 0))
    tgt_mask = jnp.broadcast_to(
        jnp.tril(jnp.ones((S_dec, S_dec), jnp.float32)), (B, S_dec, S_dec))
    src_mask = jnp.ones((B, S_dec, S_enc), jnp.float32)

    params = init_decoder_layer_params(k_p)

    out, self_w, cross_w = decoder_layer_forward(x, enc_output, src_mask, tgt_mask, params)
    out = jax.block_until_ready(out)

    assert out.shape == (B, S_dec, D_MODEL)
    assert self_w.shape == (B, NUM_HEADS, S_dec, S_dec)
    assert cross_w.shape == (B, NUM_HEADS, S_dec, S_enc)

    ref_out, ref_sw, ref_cw = ref_decoder_layer(x, enc_output, src_mask, tgt_mask, params)
    assert jnp.allclose(out, ref_out, atol=2e-2, rtol=2e-2), "output mismatch vs reference"
    assert jnp.allclose(self_w, ref_sw, atol=2e-2, rtol=2e-2), "self-attn weights mismatch"
    assert jnp.allclose(cross_w, ref_cw, atol=2e-2, rtol=2e-2), "cross-attn weights mismatch"

    print("KERNEL_OK")
</pallas_src>

<mosaic_0001>
module attributes {stable_mosaic.version = 11 : i64} {
  func.func @_mha_addnorm_kernel(%arg0: i32, %arg1: memref<1x8x128xf32, #tpu.memory_space<vmem>>, %arg2: memref<1x8x128xf32, #tpu.memory_space<vmem>>, %arg3: memref<1x8x8xf32, #tpu.memory_space<vmem>>, %arg4: memref<128x128xf32, #tpu.memory_space<vmem>>, %arg5: memref<1x128xf32, #tpu.memory_space<vmem>>, %arg6: memref<128x128xf32, #tpu.memory_space<vmem>>, %arg7: memref<1x128xf32, #tpu.memory_space<vmem>>, %arg8: memref<128x128xf32, #tpu.memory_space<vmem>>, %arg9: memref<1x128xf32, #tpu.memory_space<vmem>>, %arg10: memref<128x128xf32, #tpu.memory_space<vmem>>, %arg11: memref<1x128xf32, #tpu.memory_space<vmem>>, %arg12: memref<1x128xf32, #tpu.memory_space<vmem>>, %arg13: memref<1x128xf32, #tpu.memory_space<vmem>>, %arg14: memref<1x8x128xf32, #tpu.memory_space<vmem>>, %arg15: memref<1x8x8x8xf32, #tpu.memory_space<vmem>>) attributes {dimension_semantics = [#tpu.dimension_semantics<parallel>], iteration_bounds = array<i64: 2>, scalar_prefetch = 0 : i64, scratch_operands = 0 : i64, tpu.core_type = #tpu.core_type<tc>, window_params = [{transform_indices = @transform_0, window_bounds = array<i64: 1, 8, 128>}, {transform_indices = @transform_1, window_bounds = array<i64: 1, 8, 128>}, {transform_indices = @transform_2, window_bounds = array<i64: 1, 8, 8>}, {pipeline_mode = #tpu.pipeline_mode<synchronous>, transform_indices = @transform_3, window_bounds = array<i64: 128, 128>}, {pipeline_mode = #tpu.pipeline_mode<synchronous>, transform_indices = @transform_4, window_bounds = array<i64: 1, 128>}, {pipeline_mode = #tpu.pipeline_mode<synchronous>, transform_indices = @transform_5, window_bounds = array<i64: 128, 128>}, {pipeline_mode = #tpu.pipeline_mode<synchronous>, transform_indices = @transform_6, window_bounds = array<i64: 1, 128>}, {pipeline_mode = #tpu.pipeline_mode<synchronous>, transform_indices = @transform_7, window_bounds = array<i64: 128, 128>}, {pipeline_mode = #tpu.pipeline_mode<synchronous>, transform_indices = @transform_8, window_bounds = array<i64: 1, 128>}, {pipeline_mode = #tpu.pipeline_mode<synchronous>, transform_indices = @transform_9, window_bounds = array<i64: 128, 128>}, {pipeline_mode = #tpu.pipeline_mode<synchronous>, transform_indices = @transform_10, window_bounds = array<i64: 1, 128>}, {pipeline_mode = #tpu.pipeline_mode<synchronous>, transform_indices = @transform_11, window_bounds = array<i64: 1, 128>}, {pipeline_mode = #tpu.pipeline_mode<synchronous>, transform_indices = @transform_12, window_bounds = array<i64: 1, 128>}, {transform_indices = @transform_13, window_bounds = array<i64: 1, 8, 128>}, {transform_indices = @transform_14, window_bounds = array<i64: 1, 8, 8, 8>}]} {
    %c0 = arith.constant 0 : index
    %c0_0 = arith.constant 0 : index
    %c0_1 = arith.constant 0 : index
    %0 = vector.load %arg1[%c0, %c0_0, %c0_1] : memref<1x8x128xf32, #tpu.memory_space<vmem>>, vector<1x8x128xf32>
    %1 = vector.shape_cast %0 : vector<1x8x128xf32> to vector<8x128xf32>
    %c0_2 = arith.constant 0 : index
    %c0_3 = arith.constant 0 : index
    %c0_4 = arith.constant 0 : index
    %2 = vector.load %arg2[%c0_2, %c0_3, %c0_4] : memref<1x8x128xf32, #tpu.memory_space<vmem>>, vector<1x8x128xf32>
    %3 = vector.shape_cast %2 : vector<1x8x128xf32> to vector<8x128xf32>
    %c0_5 = arith.constant 0 : index
    %c0_6 = arith.constant 0 : index
    %c0_7 = arith.constant 0 : index
    %4 = vector.load %arg3[%c0_5, %c0_6, %c0_7] : memref<1x8x8xf32, #tpu.memory_space<vmem>>, vector<1x8x8xf32>
    %5 = vector.shape_cast %4 : vector<1x8x8xf32> to vector<8x8xf32>
    %c0_8 = arith.constant 0 : index
    %c0_9 = arith.constant 0 : index
    %6 = vector.load %arg4[%c0_8, %c0_9] : memref<128x128xf32, #tpu.memory_space<vmem>>, vector<128x128xf32>
    %cst = arith.constant dense<0.000000e+00> : vector<8x128xf32>
    %7 = tpu.matmul %1, %6, %cst {dimension_numbers = #tpu.dot_dimension_numbers<[1], [0], [0], [1], [0, 0, 1, 1], [], []>} : vector<8x128xf32>, vector<128x128xf32>, vector<8x128xf32> -> vector<8x128xf32>
    %c0_10 = arith.constant 0 : index
    %c0_11 = arith.constant 0 : index
    %8 = vector.load %arg5[%c0_10, %c0_11] : memref<1x128xf32, #tpu.memory_space<vmem>>, vector<1x128xf32>
    %9 = vector.broadcast %8 : vector<1x128xf32> to vector<8x128xf32>
    %10 = arith.addf %7, %9 : vector<8x128xf32>
    %c0_12 = arith.constant 0 : index
    %c0_13 = arith.constant 0 : index
    %11 = vector.load %arg6[%c0_12, %c0_13] : memref<128x128xf32, #tpu.memory_space<vmem>>, vector<128x128xf32>
    %cst_14 = arith.constant dense<0.000000e+00> : vector<8x128xf32>
    %12 = tpu.matmul %3, %11, %cst_14 {dimension_numbers = #tpu.dot_dimension_numbers<[1], [0], [0], [1], [0, 0, 1, 1], [], []>} : vector<8x128xf32>, vector<128x128xf32>, vector<8x128xf32> -> vector<8x128xf32>
    %c0_15 = arith.constant 0 : index
    %c0_16 = arith.constant 0 : index
    %13 = vector.load %arg7[%c0_15, %c0_16] : memref<1x128xf32, #tpu.memory_space<vmem>>, vector<1x128xf32>
    %14 = vector.broadcast %13 : vector<1x128xf32> to vector<8x128xf32>
    %15 = arith.addf %12, %14 : vector<8x128xf32>
    %c0_17 = arith.constant 0 : index
    %c0_18 = arith.constant 0 : index
    %16 = vector.load %arg8[%c0_17, %c0_18] : memref<128x128xf32, #tpu.memory_space<vmem>>, vector<128x128xf32>
    %cst_19 = arith.constant dense<0.000000e+00> : vector<8x128xf32>
    %17 = tpu.matmul %3, %16, %cst_19 {dimension_numbers = #tpu.dot_dimension_numbers<[1], [0], [0], [1], [0, 0, 1, 1], [], []>} : vector<8x128xf32>, vector<128x128xf32>, vector<8x128xf32> -> vector<8x128xf32>
    %c0_20 = arith.constant 0 : index
    %c0_21 = arith.constant 0 : index
    %18 = vector.load %arg9[%c0_20, %c0_21] : memref<1x128xf32, #tpu.memory_space<vmem>>, vector<1x128xf32>
    %19 = vector.broadcast %18 : vector<1x128xf32> to vector<8x128xf32>
    %20 = arith.addf %17, %19 : vector<8x128xf32>
    %21 = vector.shape_cast %10 : vector<8x128xf32> to vector<8x8x16xf32>
    %22 = tpu.transpose %21, [1, 0, 2] : vector<8x8x16xf32> -> vector<8x8x16xf32>
    %23 = vector.shape_cast %15 : vector<8x128xf32> to vector<8x8x16xf32>
    %24 = tpu.transpose %23, [1, 0, 2] : vector<8x8x16xf32> -> vector<8x8x16xf32>
    %25 = vector.shape_cast %20 : vector<8x128xf32> to vector<8x8x16xf32>
    %26 = tpu.transpose %25, [1, 0, 2] : vector<8x8x16xf32> -> vector<8x8x16xf32>
    "tpu.trace_start"() <{level = 10 : i32, message = "hqd,hkd->hqk"}> : () -> ()
    %cst_22 = arith.constant dense<0.000000e+00> : vector<8x8x8xf32>
    %27 = tpu.matmul %22, %24, %cst_22 {dimension_numbers = #tpu.dot_dimension_numbers<[2], [2], [1], [1], [0, 0, 0, 1, 1, 1], [0], [0]>} : vector<8x8x16xf32>, vector<8x8x16xf32>, vector<8x8x8xf32> -> vector<8x8x8xf32>
    "tpu.trace_stop"() : () -> ()
    %cst_23 = arith.constant 2.500000e-01 : f32
    %28 = vector.broadcast %cst_23 : f32 to vector<8x8x8xf32>
    %29 = arith.mulf %27, %28 : vector<8x8x8xf32>
    %30 = vector.shape_cast %5 : vector<8x8xf32> to vector<1x8x8xf32>
    %cst_24 = arith.constant 0.000000e+00 : f32
    %31 = vector.broadcast %cst_24 : f32 to vector<1x8x8xf32>
    %32 = arith.cmpf oeq, %30, %31 : vector<1x8x8xf32>
    %cst_25 = arith.constant -1.000000e+09 : f32
    %33 = vector.shape_cast %32 : vector<1x8x8xi1> to vector<1x8x8xi1>
    %34 = vector.broadcast %33 : vector<1x8x8xi1> to vector<8x8x8xi1>
    %35 = vector.broadcast %cst_25 : f32 to vector<8x8x8xf32>
    %36 = arith.select %34, %35, %29 : vector<8x8x8xi1>, vector<8x8x8xf32>
    %cst_26 = arith.constant dense<0xFF800000> : vector<8x8xf32>
    %37 = vector.multi_reduction <maximumf>, %36, %cst_26 [2] : vector<8x8x8xf32> to vector<8x8xf32>
    %38 = vector.shape_cast %37 : vector<8x8xf32> to vector<8x8x1xf32>
    %39 = vector.broadcast %38 : vector<8x8x1xf32> to vector<8x8x8xf32>
    %40 = arith.subf %36, %39 : vector<8x8x8xf32>
    %41 = math.exp %40 : vector<8x8x8xf32>
    %cst_27 = arith.constant dense<0.000000e+00> : vector<8x8xf32>
    %42 = vector.multi_reduction <add>, %41, %cst_27 [2] : vector<8x8x8xf32> to vector<8x8xf32>
    %43 = vector.shape_cast %42 : vector<8x8xf32> to vector<8x8x1xf32>
    %44 = vector.broadcast %43 : vector<8x8x1xf32> to vector<8x8x8xf32>
    %45 = arith.divf %41, %44 : vector<8x8x8xf32>
    "tpu.trace_start"() <{level = 10 : i32, message = "hqk,hkd->hqd"}> : () -> ()
    %cst_28 = arith.constant dense<0.000000e+00> : vector<8x8x16xf32>
    %46 = tpu.matmul %45, %26, %cst_28 {dimension_numbers = #tpu.dot_dimension_numbers<[2], [1], [1], [2], [0, 0, 0, 1, 1, 2], [0], [0]>} : vector<8x8x8xf32>, vector<8x8x16xf32>, vector<8x8x16xf32> -> vector<8x8x16xf32>
    "tpu.trace_stop"() : () -> ()
    %47 = tpu.transpose %46, [1, 0, 2] : vector<8x8x16xf32> -> vector<8x8x16xf32>
    %48 = vector.shape_cast %47 : vector<8x8x16xf32> to vector<8x128xf32>
    %c0_29 = arith.constant 0 : index
    %c0_30 = arith.constant 0 : index
    %49 = vector.load %arg10[%c0_29, %c0_30] : memref<128x128xf32, #tpu.memory_space<vmem>>, vector<128x128xf32>
    %cst_31 = arith.constant dense<0.000000e+00> : vector<8x128xf32>
    %50 = tpu.matmul %48, %49, %cst_31 {dimension_numbers = #tpu.dot_dimension_numbers<[1], [0], [0], [1], [0, 0, 1, 1], [], []>} : vector<8x128xf32>, vector<128x128xf32>, vector<8x128xf32> -> vector<8x128xf32>
    %c0_32 = arith.constant 0 : index
    %c0_33 = arith.constant 0 : index
    %51 = vector.load %arg11[%c0_32, %c0_33] : memref<1x128xf32, #tpu.memory_space<vmem>>, vector<1x128xf32>
    %52 = vector.broadcast %51 : vector<1x128xf32> to vector<8x128xf32>
    %53 = arith.addf %50, %52 : vector<8x128xf32>
    %54 = arith.addf %1, %53 : vector<8x128xf32>
    %cst_34 = arith.constant dense<0.000000e+00> : vector<8xf32>
    %55 = vector.multi_reduction <add>, %54, %cst_34 [1] : vector<8x128xf32> to vector<8xf32>
    %56 = vector.shape_cast %55 : vector<8xf32> to vector<8x1xf32>
    %cst_35 = arith.constant 1.280000e+02 : f32
    %57 = vector.broadcast %cst_35 : f32 to vector<8x1xf32>
    %58 = arith.divf %56, %57 : vector<8x1xf32>
    %59 = vector.broadcast %58 : vector<8x1xf32> to vector<8x128xf32>
    %60 = arith.subf %54, %59 : vector<8x128xf32>
    %61 = arith.mulf %60, %60 : vector<8x128xf32>
    %cst_36 = arith.constant dense<0.000000e+00> : vector<8xf32>
    %62 = vector.multi_reduction <add>, %61, %cst_36 [1] : vector<8x128xf32> to vector<8xf32>
    %63 = vector.shape_cast %62 : vector<8xf32> to vector<8x1xf32>
    %cst_37 = arith.constant 1.280000e+02 : f32
    %64 = vector.broadcast %cst_37 : f32 to vector<8x1xf32>
    %65 = arith.divf %63, %64 : vector<8x1xf32>
    %66 = vector.broadcast %58 : vector<8x1xf32> to vector<8x128xf32>
    %67 = arith.subf %54, %66 : vector<8x128xf32>
    %cst_38 = arith.constant 9.99999974E-6 : f32
    %68 = vector.broadcast %cst_38 : f32 to vector<8x1xf32>
    %69 = arith.addf %65, %68 : vector<8x1xf32>
    %70 = math.rsqrt %69 : vector<8x1xf32>
    %71 = vector.broadcast %70 : vector<8x1xf32> to vector<8x128xf32>
    %72 = arith.mulf %67, %71 : vector<8x128xf32>
    %c0_39 = arith.constant 0 : index
    %c0_40 = arith.constant 0 : index
    %73 = vector.load %arg12[%c0_39, %c0_40] : memref<1x128xf32, #tpu.memory_space<vmem>>, vector<1x128xf32>
    %74 = vector.broadcast %73 : vector<1x128xf32> to vector<8x128xf32>
    %75 = arith.mulf %72, %74 : vector<8x128xf32>
    %c0_41 = arith.constant 0 : index
    %c0_42 = arith.constant 0 : index
    %76 = vector.load %arg13[%c0_41, %c0_42] : memref<1x128xf32, #tpu.memory_space<vmem>>, vector<1x128xf32>
    %77 = vector.broadcast %76 : vector<1x128xf32> to vector<8x128xf32>
    %78 = arith.addf %75, %77 : vector<8x128xf32>
    %c0_43 = arith.constant 0 : index
    %c0_44 = arith.constant 0 : index
    %c0_45 = arith.constant 0 : index
    %79 = vector.load %arg14[%c0_43, %c0_44, %c0_45] : memref<1x8x128xf32, #tpu.memory_space<vmem>>, vector<1x8x128xf32>
    %80 = vector.shape_cast %79 : vector<1x8x128xf32> to vector<8x128xf32>
    %81 = vector.shape_cast %78 : vector<8x128xf32> to vector<1x8x128xf32>
    tpu.vector_store %arg14[%c0_43, %c0_44, %c0_45], %81 {strides = array<i32>} : memref<1x8x128xf32, #tpu.memory_space<vmem>>, vector<1x8x128xf32>,
    %c0_46 = arith.constant 0 : index
    %c0_47 = arith.constant 0 : index
    %c0_48 = arith.constant 0 : index
    %c0_49 = arith.constant 0 : index
    %82 = vector.load %arg15[%c0_46, %c0_47, %c0_48, %c0_49] : memref<1x8x8x8xf32, #tpu.memory_space<vmem>>, vector<1x8x8x8xf32>
    %83 = vector.shape_cast %82 : vector<1x8x8x8xf32> to vector<8x8x8xf32>
    %84 = vector.shape_cast %45 : vector<8x8x8xf32> to vector<1x8x8x8xf32>
    tpu.vector_store %arg15[%c0_46, %c0_47, %c0_48, %c0_49], %84 {strides = array<i32>} : memref<1x8x8x8xf32, #tpu.memory_space<vmem>>, vector<1x8x8x8xf32>,
    return
  }
  func.func @transform_0(%arg0: i32) -> (i32, i32, i32) {
    %c0_i32 = arith.constant 0 : i32
    %c0_i32_0 = arith.constant 0 : i32
    %c0_i32_1 = arith.constant 0 : i32
    return %arg0, %c0_i32, %c0_i32_0 : i32, i32, i32
  }
  func.func @transform_1(%arg0: i32) -> (i32, i32, i32) {
    %c0_i32 = arith.constant 0 : i32
    %c0_i32_0 = arith.constant 0 : i32
    %c0_i32_1 = arith.constant 0 : i32
    return %arg0, %c0_i32, %c0_i32_0 : i32, i32, i32
  }
  func.func @transform_2(%arg0: i32) -> (i32, i32, i32) {
    %c0_i32 = arith.constant 0 : i32
    %c0_i32_0 = arith.constant 0 : i32
    %c0_i32_1 = arith.constant 0 : i32
    return %arg0, %c0_i32, %c0_i32_0 : i32, i32, i32
  }
  func.func @transform_3(%arg0: i32) -> (i32, i32) {
    %c0_i32 = arith.constant 0 : i32
    %c0_i32_0 = arith.constant 0 : i32
    %c0_i32_1 = arith.constant 0 : i32
    return %c0_i32, %c0_i32_0 : i32, i32
  }
  func.func @transform_4(%arg0: i32) -> (i32, i32) {
    %c0_i32 = arith.constant 0 : i32
    %c0_i32_0 = arith.constant 0 : i32
    %c0_i32_1 = arith.constant 0 : i32
    return %c0_i32, %c0_i32_0 : i32, i32
  }
  func.func @transform_5(%arg0: i32) -> (i32, i32) {
    %c0_i32 = arith.constant 0 : i32
    %c0_i32_0 = arith.constant 0 : i32
    %c0_i32_1 = arith.constant 0 : i32
    return %c0_i32, %c0_i32_0 : i32, i32
  }
  func.func @transform_6(%arg0: i32) -> (i32, i32) {
    %c0_i32 = arith.constant 0 : i32
    %c0_i32_0 = arith.constant 0 : i32
    %c0_i32_1 = arith.constant 0 : i32
    return %c0_i32, %c0_i32_0 : i32, i32
  }
  func.func @transform_7(%arg0: i32) -> (i32, i32) {
    %c0_i32 = arith.constant 0 : i32
    %c0_i32_0 = arith.constant 0 : i32
    %c0_i32_1 = arith.constant 0 : i32
    return %c0_i32, %c0_i32_0 : i32, i32
  }
  func.func @transform_8(%arg0: i32) -> (i32, i32) {
    %c0_i32 = arith.constant 0 : i32
    %c0_i32_0 = arith.constant 0 : i32
    %c0_i32_1 = arith.constant 0 : i32
    return %c0_i32, %c0_i32_0 : i32, i32
  }
  func.func @transform_9(%arg0: i32) -> (i32, i32) {
    %c0_i32 = arith.constant 0 : i32
    %c0_i32_0 = arith.constant 0 : i32
    %c0_i32_1 = arith.constant 0 : i32
    return %c0_i32, %c0_i32_0 : i32, i32
  }
  func.func @transform_10(%arg0: i32) -> (i32, i32) {
    %c0_i32 = arith.constant 0 : i32
    %c0_i32_0 = arith.constant 0 : i32
    %c0_i32_1 = arith.constant 0 : i32
    return %c0_i32, %c0_i32_0 : i32, i32
  }
  func.func @transform_11(%arg0: i32) -> (i32, i32) {
    %c0_i32 = arith.constant 0 : i32
    %c0_i32_0 = arith.constant 0 : i32
    %c0_i32_1 = arith.constant 0 : i32
    return %c0_i32, %c0_i32_0 : i32, i32
  }
  func.func @transform_12(%arg0: i32) -> (i32, i32) {
    %c0_i32 = arith.constant 0 : i32
    %c0_i32_0 = arith.constant 0 : i32
    %c0_i32_1 = arith.constant 0 : i32
    return %c0_i32, %c0_i32_0 : i32, i32
  }
  func.func @transform_13(%arg0: i32) -> (i32, i32, i32) {
    %c0_i32 = arith.constant 0 : i32
    %c0_i32_0 = arith.constant 0 : i32
    %c0_i32_1 = arith.constant 0 : i32
    return %arg0, %c0_i32, %c0_i32_0 : i32, i32, i32
  }
  func.func @transform_14(%arg0: i32) -> (i32, i32, i32, i32) {
    %c0_i32 = arith.constant 0 : i32
    %c0_i32_0 = arith.constant 0 : i32
    %c0_i32_1 = arith.constant 0 : i32
    %c0_i32_2 = arith.constant 0 : i32
    return %arg0, %c0_i32, %c0_i32_0, %c0_i32_1 : i32, i32, i32, i32
  }
}

</mosaic_0001>

<bundles_post_ra>
// kernel: tpu_custom_call.1
= control target key start
LH: loop header
LB: loop body
LE: loop exit
PB: predicated region body
PF: predicated region fallthrough
CT: control target
= control target key end

     0   :  { %s5527_s0 = inlined_call_operand.hbm [shape: f32[2,8,128], index: 0, kind: input, shape index: {}]   ;;  %s5528_s1 = inlined_call_operand.hbm [shape: f32[2,8,128], index: 1, kind: input, shape index: {}]   ;;  %s5529_s2 = inlined_call_operand.hbm [shape: f32[2,8,8], index: 2, kind: input, shape index: {}]   ;;  %s5530_s3 = inlined_call_operand.hbm [shape: f32[128,128], index: 3, kind: input, shape index: {}]   ;;  %s5531_s4 = inlined_call_operand.vmem [shape: f32[1,128], index: 4, kind: input, shape index: {}]   ;;  %s5532_s5 = inlined_call_operand.hbm [shape: f32[128,128], index: 5, kind: input, shape index: {}]   ;;  %s5533_s6 = inlined_call_operand.vmem [shape: f32[1,128], index: 6, kind: input, shape index: {}]   ;;  %s5534_s7 = inlined_call_operand.hbm [shape: f32[128,128], index: 7, kind: input, shape index: {}]   ;;  %s5535_s8 = inlined_call_operand.vmem [shape: f32[1,128], index: 8, kind: input, shape index: {}]   ;;  %s5536_s9 = inlined_call_operand.hbm [shape: f32[128,128], index: 9, kind: input, shape index: {}]   ;;  %s5537_s10 = inlined_call_operand.vmem [shape: f32[1,128], index: 10, kind: input, shape index: {}]   ;;  %s5538_s11 = inlined_call_operand.vmem [shape: f32[1,128], index: 11, kind: input, shape index: {}]   ;;  %s5539_s12 = inlined_call_operand.vmem [shape: f32[1,128], index: 12, kind: input, shape index: {}]   ;;  %s5540_s13 = inlined_call_operand.hbm [shape: f32[2,8,128], index: 13, kind: output, shape index: {0}]   ;;  %s5541_s14 = inlined_call_operand.hbm [shape: f32[2,8,8,8], index: 14, kind: output, shape index: {1}]  }
   0x1   :  { %5565 = sst [smem:[#allocation29_spill]] %s5527_s0 }
   0x2   :  { %5566 = sst [smem:[#allocation30_spill]] %s5528_s1 }
   0x3   :  { %5567 = sst [smem:[#allocation31_spill]] %s5530_s3 }
   0x4   :  { %5568 = sst [smem:[#allocation32_spill]] %s5534_s7 }
   0x5   :  { %5569 = sst [smem:[#allocation33_spill]] %s5538_s11 }
   0x6   :  { %5570 = sst [smem:[#allocation34_spill]] %s5539_s12 }
   0x7   :  { %5571 = sst [smem:[#allocation35_spill]] %s5540_s13 }
   0x8   :  { %5572 = sst [smem:[#allocation36_spill]] %s5541_s14 }
   0x9   :  { %20 = vsyncpa [#allocation3], 0 }
   0xa   :  { %22 = vsyncpa [#allocation3 + $0x1], 0 }
   0xb   :  { %23 = vsyncpa [#allocation6], 0 }
   0xc   :  { %25 = vsyncpa [#allocation6 + $0x1], 0 }
   0xd   :  { %26 = vsyncpa [#allocation9], 0 }
   0xe   :  { %27 = vsyncpa [#allocation12], 0 }
   0xf   :  { %28 = vsyncpa [#allocation4], 0 }
  0x10   :  { %30 = vsyncpa [#allocation4 + $0x1], 0 }
  0x11   :  { %31 = vsyncpa [#allocation16], 0 }
  0x12   :  { %33 = vsyncpa [#allocation16 + $0x1], 0  ;;  %s4710_s29 = smov 0   ;;  %s4712_s30 = smov 0  }
  0x13   :  { %s4714_s15 = smov 0   ;;  %s4716_s16 = smov 0  }
  0x14 LB: > { %5573 = sst [smem:[#allocation23_spill]] %s4597_s29  ;;  %s4611_s17 = smov [#allocation8]   ;;  %s4609_s16 = sphi %s4716_s16, %s5614_s16   ;;  %s4605_s15 = sphi %s4714_s15, %s5618_s15   ;;  %s4601_s30 = sphi %s4712_s30, %s5617_s30   ;;  %s4597_s29 = sphi %s4710_s29, %s5616_s29  }
  0x15   : > { %5574 = sst [smem:[#allocation24_spill]] %s4609_s16  ;;  %s396_s18 = sshll.u32 %s4611_s17, 4  ;;  %s397_s18 = int_to_ptr.vmem [resolvable:$true] %s396_s18 }
  0x16   : > { %s4731_s19 = sadd.s32 4294967295, %s4609_s16   ;;  %p3751_p0 = scmp.ge.s32.totalorder %s4609_s16, 1 }
  0x17   : > { %p5557_p1 = scmp.eq.s32.totalorder %s4731_s19, 0  ;;  %p384_p2 = scmp.lt.s32.totalorder %s4609_s16, 3 }
  0x18   : > { %s4612_s21 = smov [#allocation11]   ;;  %s4326_s24 = scalar_lea.vmem %s397_s18, 2048 }
  0x19   : > { %p4736_p3 = pnand %p3751_p0, %p384_p2  ;;  %s428_s22 = sshll.u32 %s4612_s21, 4  ;;  %s429_s22 = int_to_ptr.vmem [resolvable:$true] %s428_s22 }
  0x1a   : > { %p4327_p8 = scmp.ne.s32.totalorder %s397_s18, %s4326_s24  ;;  %p4334_p11 = scmp.lt.s32.totalorder %s397_s18, %s397_s18 }
  0x1b   : > { %s5575_s20 = scalar_select %p4736_p3, 1, 0 }
  0x1c   : > { %p4189_p5 = pneg %p4736_p3  ;;  %p4335_p12 = scmp.lt.s32.totalorder %s4326_s24, %s4326_s24 }
  0x1e   : > { %p4745_p6 = pnand %p4189_p5, %p5557_p1  ;;  %p4336_p13 = por %p4335_p12, %p4334_p11 }
  0x20   : > { %s5576_s23 = scalar_select %p4745_p6, 1, 0 }
  0x21   : > { %p5544_p7 = pneg %p4745_p6 }
  0x23   : > { %p4329_p9 = pnand %p4327_p8, %p5544_p7 }
  0x25   : > { %p4330_p10 = pneg %p4329_p9 }
  0x27   : > { %p4337_p0 = pnand %p4336_p13, %p4330_p10 }
  0x29   : > { %4340 = shalt.err (!%p4337_p0)
}
  0x2a   : > { %s5542_s25 = smov 128   ;;  %s5545_s26 = smov 8  }
  0x2b   : > { %s5577_s3 = sld [smem:[#allocation31_spill]]  ;;  %s4352_s17 = scalar_lea.vmem %s429_s22, 2048 }
  0x2c   : > { %p4353_p2 = scmp.ne.s32.totalorder %s429_s22, %s4352_s17  ;;  %p4360_p9 = scmp.lt.s32.totalorder %s429_s22, %s429_s22 }
  0x2d   : > { %p4361_p10 = scmp.lt.s32.totalorder %s4352_s17, %s4352_s17 }
  0x2e   : > { %p4355_p5 = pnand %p4353_p2, %p5544_p7 }
  0x2f   : > { %p4362_p11 = por %p4361_p10, %p4360_p9 }
  0x30   : > { %p4356_p8 = pneg %p4355_p5 }
  0x31   : > { %4192 = dma.hbm_to_vmem [thread:$0]  (!%p4745_p6), %s5577_s3, 2048, %s397_s18, [#allocation9], %s5542_s25, %s5542_s25, %s5545_s26  }
  0x32   : > { %p4363_p12 = pnand %p4362_p11, %p4356_p8 }
  0x34   : > { %4366 = shalt.err (!%p4363_p12)
}
  0x35   : > { %s5578_s7 = sld [smem:[#allocation32_spill]]  ;;  %s3750_s18 = sadd.s32 4294967294, %s4609_s16  }
  0x36   : > { %s4775_s27 = sadd.s32 1, %s4609_s16   ;;  %s46_s17 = sadd.s32 1, %s4605_s15 }
  0x37   : > { %5579 = sst [smem:[#allocation25_spill]] %s4775_s27  ;;  %s43_s28 = ssub.s32 %s4609_s16, %s4775_s27 }
  0x38   : > { %p44_p13 = scmp.eq.s32.totalorder %s43_s28, 0  ;;  %p53_p0 = scmp.ne.s32.totalorder %s4605_s15, %s4601_s30 }
  0x39   : > { %p54_p2 = scmp.eq.s32.totalorder %s4609_s16, 0  ;;  %p59_p5 = scmp.ne.s32.totalorder %s4601_s30, %s4597_s29 }
  0x3a   : > { %s4786_s21 = scalar_select %p44_p13, %s4605_s15, %s46_s17  }
  0x3b   : > { %4198 = dma.hbm_to_vmem [thread:$0]  (!%p4745_p6), %s5578_s7, 2048, %s429_s22, [#allocation12], %s5542_s25, %s5542_s25, %s5545_s26  }
  0x3c   : > { %5580 = sst [smem:[#allocation26_spill]] %s4786_s21  ;;  %p55_p8 = por %p54_p2, %p53_p0 }
  0x3d   : > { %p4790_p9 = por %p5557_p1, %p59_p5  ;;  %p345_p10 = scmp.eq.s32.totalorder %s4731_s19, 1 }
  0x3e   : > { %p351_p11 = scmp.eq.s32.totalorder %s3750_s18, 1  ;;  %p4223_p12 = scmp.lt.s32.totalorder %s4609_s16, 2 }
  0x3f   : > { %s5581_s24 = scalar_select %p4790_p9, 1, 0 }
  0x40   : > { %s5549_s22 = sand.u32 1, %s4605_s15   ;;  %p4797_p4 = por %p345_p10, %p53_p0 }
  0x41   : > { %p4801_p7 = por %p351_p11, %p59_p5  ;;  %s4807_s17 = sshll.u32 %s5549_s22, 3 }
  0x42   : > { %s5582_s25 = scalar_select %p4797_p4, 1, 0 }
  0x43   : > { %s5584_s28 = scalar_select %p4801_p7, 1, 0 }
  0x44   : > { %5583 = sst [smem:[#allocation27_spill]] %s5582_s25  ;;  %s4810_s26 = sshll.u32 %s4609_s16, 7 }
  0x45   : > { %5585 = sst [smem:[#allocation28_spill]] %s5584_s28  ;;  %p4812_p13 = pnand %p4223_p12, %p55_p8 }
  0x46   : > { %s485_s18 = sand.u32 1, %s4609_s16   ;;  %s5587_s1 = sld [smem:[#allocation30_spill]] }
  0x47   : > { %s489_s22 = scalar_lea.vmem [#allocation5], %s4807_s17  ;;  %s4615_s29 = smov [#allocation10]  }
  0x48   : > { %s496_s28 = sshll.u32 %s489_s22, 4  ;;  %s412_s13 = sshll.u32 %s4615_s29, 4  ;;  %s4824_s28 = int_to_ptr.vmem [resolvable:$true] %s496_s28  ;;  %s413_s13 = int_to_ptr.vmem [resolvable:$true] %s412_s13 }
  0x49   : > { %s4826_s12 = scalar_lea.sflag [#allocation6], %s485_s18  ;;  %p4832_p2 = pneg %p4812_p13 }
  0x4b   : > { %s5588_s16 = scalar_select %p4832_p2, 1, 0 }
  0x4c   : > { %s4821_s27 = scalar_lea.hbm %s5587_s1, %s4810_s26  ;;  %s4372_s22 = scalar_lea.hbm %s5587_s1, 256 }
  0x4d   : > { %s4367_s11 = scalar_lea.hbm %s4821_s27, 128  ;;  %p4373_p10 = scmp.lt.s32.totalorder %s4821_s27, %s5587_s1 }
  0x4e   : > { %p4368_p0 = scmp.ne.s32.totalorder %s4821_s27, %s4367_s11  ;;  %p4374_p11 = scmp.lt.s32.totalorder %s4372_s22, %s4367_s11 }
  0x50   : > { %p4370_p5 = pnand %p4832_p2, %p4368_p0  ;;  %p4375_p12 = por %p4374_p11, %p4373_p10 }
  0x52   : > { %p4371_p8 = pneg %p4370_p5 }
  0x54   : > { %p4376_p1 = pnand %p4375_p12, %p4371_p8 }
  0x56   : > { %4379 = shalt.err (!%p4376_p1)
}
  0x57   : > { %s4380_s29 = scalar_lea.vmem %s4824_s28, 128  ;;  %s4616_s18 = smov [#allocation5]  }
  0x58   : > { %p4381_p7 = scmp.ne.s32.totalorder %s4824_s28, %s4380_s29  ;;  %s4385_s7 = sshll.u32 %s4616_s18, 4  ;;  %s4386_s7 = int_to_ptr.vmem [resolvable:$false] %s4385_s7 }
  0x59   : > { %s4387_s21 = scalar_lea.vmem %s4386_s7, 256  ;;  %p4388_p4 = scmp.lt.s32.totalorder %s4824_s28, %s4386_s7 }
  0x5a   : > { %p4383_p0 = pnand %p4381_p7, %p4832_p2  ;;  %p4389_p9 = scmp.lt.s32.totalorder %s4387_s21, %s4380_s29 }
  0x5c   : > { %p4384_p5 = pneg %p4383_p0  ;;  %p4390_p3 = por %p4389_p9, %p4388_p4 }
  0x5e   : > { %p4391_p6 = pnand %p4390_p3, %p4384_p5 }
  0x60   : > { %4394 = shalt.err (!%p4391_p6)
}
  0x61   : > { %4208 = dma.hbm_to_vmem [thread:$0]  (!%p4812_p13), %s4821_s27, 128, %s4824_s28, %s4826_s12  }
  0x62   : > { %s4406_s11 = scalar_lea.vmem %s413_s13, 2048  ;;  %p5589_p7 = scmp.ne.s32.totalorder %s5576_s23, 0 }
  0x63   : > { %p4407_p1 = scmp.ne.s32.totalorder %s413_s13, %s4406_s11  ;;  %p4414_p12 = scmp.lt.s32.totalorder %s413_s13, %s413_s13 }
  0x64   : > { %p5590_p8 = pneg %p5589_p7  ;;  %p4415_p0 = scmp.lt.s32.totalorder %s4406_s11, %s4406_s11 }
  0x66   : > { %p4409_p10 = pnand %p4407_p1, %p5590_p8  ;;  %p4416_p2 = por %p4415_p0, %p4414_p12 }
  0x68   : > { %p4410_p11 = pneg %p4409_p10 }
  0x6a   : > { %p4417_p4 = pnand %p4416_p2, %p4410_p11 }
  0x6c   : > { %4420 = shalt.err (!%p4417_p4)
}
  0x6d   : > { %s5591_s14 = smov 8   ;;  %s5592_s25 = smov 128  }
  0x6e   : > { %4195 = dma.hbm_to_vmem [thread:$0]  (!%p5589_p7), %s5532_s5, 2048, %s413_s13, [#allocation9], %s5592_s25, %s5592_s25, %s5591_s14  }
  0x6f   : > { %s4617_s27 = smov [#allocation13]   ;;  %p5593_p6 = pmov %p5590_p8 }
  0x70   : > { %s444_s28 = sshll.u32 %s4617_s27, 4  ;;  %s445_s28 = int_to_ptr.vmem [resolvable:$true] %s444_s28 }
  0x71   : > { %s4432_s18 = scalar_lea.vmem %s445_s28, 2048  ;;  %p4440_p5 = scmp.lt.s32.totalorder %s445_s28, %s445_s28 }
  0x72   : > { %p4433_p3 = scmp.ne.s32.totalorder %s445_s28, %s4432_s18  ;;  %p4441_p1 = scmp.lt.s32.totalorder %s4432_s18, %s4432_s18 }
  0x74   : > { %p4435_p9 = pnand %p4433_p3, %p5593_p6  ;;  %p4442_p8 = por %p4441_p1, %p4440_p5 }
  0x76   : > { %p4436_p2 = pneg %p4435_p9 }
  0x78   : > { %p4443_p10 = pnand %p4442_p8, %p4436_p2 }
  0x7a   : > { %4446 = shalt.err (!%p4443_p10)
}
  0x7b   : > { %4201 = dma.hbm_to_vmem [thread:$0]  (!%p5589_p7), %s5536_s9, 2048, %s445_s28, [#allocation12], %s5592_s25, %s5592_s25, %s5591_s14  }
  0x7c   : > { %s5594_s0 = sld [smem:[#allocation29_spill]]  ;;  %s471_s23 = scalar_lea.vmem [#allocation2], %s4807_s17 }
  0x7d   : > { %s478_s29 = sshll.u32 %s471_s23, 4  ;;  %s5595_s27 = sand.u32 1, %s4605_s15   ;;  %s479_s29 = int_to_ptr.vmem [resolvable:$true] %s478_s29 }
  0x7e   : > { %s468_s18 = scalar_lea.sflag [#allocation3], %s5595_s27  ;;  %p5596_p12 = scmp.ne.s32.totalorder %s5588_s16, 0 }
  0x82   : > { %s4881_s22 = scalar_lea.hbm %s5594_s0, %s4810_s26  ;;  %s4452_s25 = scalar_lea.hbm %s5594_s0, 256 }
  0x83   : > { %s4447_s1 = scalar_lea.hbm %s4881_s22, 128  ;;  %p4453_p7 = scmp.lt.s32.totalorder %s4881_s22, %s5594_s0 }
  0x84   : > { %p4448_p11 = scmp.ne.s32.totalorder %s4881_s22, %s4447_s1  ;;  %p4454_p3 = scmp.lt.s32.totalorder %s4452_s25, %s4447_s1 }
  0x86   : > { %p4450_p0 = pnand %p4448_p11, %p5596_p12  ;;  %p4455_p6 = por %p4454_p3, %p4453_p7 }
  0x88   : > { %p4451_p4 = pneg %p4450_p0 }
  0x8a   : > { %p4456_p9 = pnand %p4455_p6, %p4451_p4 }
  0x8c   : > { %4459 = shalt.err (!%p4456_p9)
}
  0x8d   : > { %s4460_s21 = scalar_lea.vmem %s479_s29, 128  ;;  %s4618_s11 = smov [#allocation2]  }
  0x8e   : > { %p4461_p2 = scmp.ne.s32.totalorder %s479_s29, %s4460_s21  ;;  %s4465_s23 = sshll.u32 %s4618_s11, 4  ;;  %s4466_s23 = int_to_ptr.vmem [resolvable:$false] %s4465_s23 }
  0x8f   : > { %s4467_s27 = scalar_lea.vmem %s4466_s23, 256  ;;  %p4468_p8 = scmp.lt.s32.totalorder %s479_s29, %s4466_s23 }
  0x90   : > { %p4463_p5 = pnand %p4461_p2, %p5596_p12  ;;  %p4469_p10 = scmp.lt.s32.totalorder %s4467_s27, %s4460_s21 }
  0x92   : > { %p4464_p1 = pneg %p4463_p5  ;;  %p4470_p11 = por %p4469_p10, %p4468_p8 }
  0x94   : > { %p4471_p0 = pnand %p4470_p11, %p4464_p1 }
  0x96   : > { %4474 = shalt.err (!%p4471_p0)
}
  0x97   : > { %4205 = dma.hbm_to_vmem [thread:$0]  (!%p4812_p13), %s4881_s22, 128, %s479_s29, %s468_s18  }
  0x98   : > { %s512_s14 = scalar_lea.hbm %s5529_s2, %s4810_s26  ;;  %s507_s25 = scalar_lea.vmem [#allocation7], %s4807_s17 }
  0x99   : > { %s514_s28 = sshll.u32 %s507_s25, 4  ;;  %s4475_s7 = scalar_lea.hbm %s512_s14, 128  ;;  %s515_s28 = int_to_ptr.vmem [resolvable:$true] %s514_s28 }
  0x9a   : > { %p4476_p4 = scmp.ne.s32.totalorder %s512_s14, %s4475_s7  ;;  %s4480_s23 = scalar_lea.hbm %s5529_s2, 256 }
  0x9b   : > { %p4481_p6 = scmp.lt.s32.totalorder %s512_s14, %s5529_s2  ;;  %p4482_p9 = scmp.lt.s32.totalorder %s4480_s23, %s4475_s7 }
  0x9c   : > { %p4478_p7 = pnand %p4476_p4, %p5596_p12 }
  0x9d   : > { %p4483_p2 = por %p4482_p9, %p4481_p6 }
  0x9e   : > { %p4479_p3 = pneg %p4478_p7 }
  0xa0   : > { %p4484_p5 = pnand %p4483_p2, %p4479_p3 }
  0xa2   : > { %4487 = shalt.err (!%p4484_p5)
}
  0xa3   : > { %s4488_s26 = scalar_lea.vmem %s515_s28, 128  ;;  %s4619_s17 = smov [#allocation7]  }
  0xa4   : > { %p4489_p1 = scmp.ne.s32.totalorder %s515_s28, %s4488_s26  ;;  %s4493_s22 = sshll.u32 %s4619_s17, 4  ;;  %s4494_s22 = int_to_ptr.vmem [resolvable:$false] %s4493_s22 }
  0xa5   : > { %s4495_s29 = scalar_lea.vmem %s4494_s22, 256  ;;  %p4496_p11 = scmp.lt.s32.totalorder %s515_s28, %s4494_s22 }
  0xa6   : > { %p4491_p8 = pnand %p4489_p1, %p5596_p12  ;;  %p4497_p0 = scmp.lt.s32.totalorder %s4495_s29, %s4488_s26 }
  0xa8   : > { %p4492_p10 = pneg %p4491_p8  ;;  %p4498_p4 = por %p4497_p0, %p4496_p11 }
  0xaa   : > { %p4499_p7 = pnand %p4498_p4, %p4492_p10 }
  0xac   : > { %4502 = shalt.err (!%p4499_p7)
}
  0xad   : > { %4211 = dma.hbm_to_vmem [thread:$0]  (!%p4812_p13), %s512_s14, 128, %s515_s28, %s4826_s12  }
  0xae   : > { %p5597_p3 = scmp.ne.s32.totalorder %s5575_s20, 0 }
  0xaf   : > { %s4923_s0 = sand.u32 (!%p5597_p3), 1, %s4601_s30   ;;  %p5598_p12 = scmp.ne.s32.totalorder (!%p5597_p3), %s5581_s24, 0 }
  0xb0   : > { %523 = sbr.rel (%p5597_p3) target bundleno = 2010 (0x7da), region = 72  ;;  %s4926_s16 = sshll.u32 (!%p5597_p3), %s4923_s0, 3 }
  0xb1   : > { %s526_s18 = scalar_lea.sflag (!%p5597_p3), [#allocation3], %s4923_s0  ;;  %s529_s1 = scalar_lea.vmem (!%p5597_p3), [#allocation2], %s4926_s16 }
  0xb5   : > { %4572 = dma.done.wait (%p5598_p12), %s526_s18, 128  }
  0xb6   : > { %4574 = vsyncadd (%p5598_p12), %s526_s18, 4294967168  ;;  %s534_s3 = sand.u32 1, %s4731_s19   ;;  %s538_s20 = scalar_lea.vmem [#allocation5], %s4926_s16 }
  0xb7   : > { %s535_s12 = scalar_lea.sflag [#allocation6], %s534_s3 }
  0xb8   : > { %4576 = dma.done.wait (%p5598_p12), %s535_s12, 256  }
  0xb9   : > { %4578 = vsyncadd (%p5598_p12), %s535_s12, 4294967040  ;;  %s547_s13 = scalar_lea.vmem [#allocation7], %s4926_s16  ;;  %p5599_p13 = scmp.eq.s32.totalorder %s4731_s19, 0 }
  0xbb   : > { %4580 = dma.done.wait (%p5599_p13), [#allocation9], 4096   ;;  %p5600_p6 = pmov %p5599_p13 }
  0xbd   : > { %4582 = vsyncadd (%p5600_p6), [#allocation9], 4294963200  ;;  %p5601_p9 = pmov %p5600_p6 }
  0xbe   : > { %p5602_p2 = pmov %p5600_p6 }
  0xbf   : > { %4584 = dma.done.wait (%p5601_p9), [#allocation12], 4096  }
  0xc0   : > { %4586 = vsyncadd (%p5602_p2), [#allocation12], 4294963200  ;;  %v4620_v0 = vmov 0.0   ;;  %vm4621_vm0 = vmmov 0   ;;  %v734_v1 = vld [vmem:[#allocation10 + $0x78] sm:$0xff]  ;;  %v733_v3 = vld [vmem:[#allocation10 + $0x70] sm:$0xff]  ;;  %v932_v61 = vlaneseq }
  0xc1   : > { %3978 = vmatprep.subr.mxu1 %v4620_v0  ;;  %3943 = vmatprep.subr.mxu0 %v4620_v0  ;;  %v641_v2 = vld [vmem:[#allocation8 + $0x78] sm:$0xff]  ;;  %v640_v4 = vld [vmem:[#allocation8 + $0x70] sm:$0xff]  ;;  %v732_v5 = vld [vmem:[#allocation10 + $0x68] sm:$0xff]  ;;  %s4622_s7 = smov 80   ;;  %s4623_s21 = smov 112   ;;  %vm1787_vm1 = vcmask 130048  }
  0xc2   : > { %4010 = vmatprep.mubr.msk.f32.mxu1 %vm4621_vm0, %v4620_v0  ;;  %3975 = vmatprep.mubr.msk.f32.mxu0 %vm4621_vm0, %v4620_v0  ;;  %v639_v6 = vld [vmem:[#allocation8 + $0x68] sm:$0xff]  ;;  %v731_v7 = vld [vmem:[#allocation10 + $0x60] sm:$0xff]  ;;  %v730_v9 = vld [vmem:[#allocation10 + $0x58] sm:$0xff]  ;;  %s4624_s11 = smov 96   ;;  %s4625_s23 = smov 64   ;;  %vm2415_vm3 = vcmask 64512  }
  0xc3   : > { %3979 = vmatpush3.msra.mxu1 %v734_v1  ;;  %3944 = vmatpush3.msra.mxu0 %v641_v2  ;;  %v638_v8 = vld [vmem:[#allocation8 + $0x60] sm:$0xff]  ;;  %v637_v10 = vld [vmem:[#allocation8 + $0x58] sm:$0xff]  ;;  %v729_v11 = vld [vmem:[#allocation10 + $0x50] sm:$0xff]  ;;  %s4626_s27 = smov 48   ;;  %s4627_s26 = smov 32   ;;  %v933_v2 = vshrl.u32 %v932_v61, 7 }
  0xc4   : > { %3980 = vmatprep.subr.mxu1 %v4620_v0  ;;  %3945 = vmatprep.subr.mxu0 %v4620_v0  ;;  %v636_v12 = vld [vmem:[#allocation8 + $0x50] sm:$0xff]  ;;  %v728_v13 = vld [vmem:[#allocation10 + $0x48] sm:$0xff]  ;;  %v727_v15 = vld [vmem:[#allocation10 + $0x40] sm:$0xff]  ;;  %s4628_s17 = smov 16   ;;  %v4629_v59 = vmov 1983009808  }
  0xc5   : > { %3981 = vmatpush3.msra.mxu1 %v733_v3  ;;  %3946 = vmatpush3.msra.mxu0 %v640_v4  ;;  %v635_v14 = vld [vmem:[#allocation8 + $0x48] sm:$0xff]  ;;  %v634_v16 = vld [vmem:[#allocation8 + $0x40] sm:$0xff]  ;;  %v726_v17 = vld [vmem:[#allocation10 + $0x38] sm:$0xff]  ;;  %v930_v60 = vunpack.c.l.s4 %v4629_v59  ;;  %v4630_v62 = vmov 1934713408   ;;  %s3772_s18 = sshll.u32 %s4923_s0, 6 }
  0xc6   : > { %3982 = vmatprep.subr.mxu1 %v4620_v0  ;;  %3947 = vmatprep.subr.mxu0 %v4620_v0  ;;  %v633_v18 = vld [vmem:[#allocation8 + $0x38] sm:$0xff]  ;;  %v725_v19 = vld [vmem:[#allocation10 + $0x30] sm:$0xff]  ;;  %v724_v21 = vld [vmem:[#allocation10 + $0x28] sm:$0xff]  ;;  %v994_v63 = vunpack.c.l.s4 %v4630_v62  ;;  %s5314_s3 = scalar_lea.vmem [#allocation15], %s3772_s18  ;;  %vm3389_vm4 = vcmask 261120   ;;  %vm3391_vm5 = vcmask 392192  }
  0xc7   : > { %3983 = vmatpush3.msra.mxu1 %v732_v5  ;;  %3948 = vmatpush3.msra.mxu0 %v639_v6  ;;  %v632_v20 = vld [vmem:[#allocation8 + $0x30] sm:$0xff]  ;;  %v631_v22 = vld [vmem:[#allocation8 + $0x28] sm:$0xff]  ;;  %v723_v23 = vld [vmem:[#allocation10 + $0x20] sm:$0xff]  ;;  %v931_v1 = vunpack.c.0.s8 %v930_v60  ;;  %vm3393_vm6 = vcmask 523264   ;;  %vm3395_vm7 = vcmask 654336   ;;  %vm3397_vm8 = vcmask 785408  }
  0xc8   : > { %3984 = vmatprep.subr.mxu1 %v4620_v0  ;;  %3949 = vmatprep.subr.mxu0 %v4620_v0  ;;  %v630_v24 = vld [vmem:[#allocation8 + $0x20] sm:$0xff]  ;;  %v722_v25 = vld [vmem:[#allocation10 + $0x18] sm:$0xff]  ;;  %v721_v27 = vld [vmem:[#allocation10 + $0x10] sm:$0xff]  ;;  %v995_v5 = vunpack.c.0.s8 %v994_v63  ;;  %vm3399_vm9 = vcmask 916480   ;;  %s3842_s24 = sshll.u32 %s4731_s19, 10  ;;  %s3564_s14 = sshll.u32 %s5314_s3, 4  ;;  %s5460_s14 = int_to_ptr.vmem [resolvable:$true] %s3564_s14 }
  0xc9   : > { %3985 = vmatpush3.msra.mxu1 %v731_v7  ;;  %3950 = vmatpush3.msra.mxu0 %v638_v8  ;;  %v629_v26 = vld [vmem:[#allocation8 + $0x18] sm:$0xff]  ;;  %v628_v28 = vld [vmem:[#allocation8 + $0x10] sm:$0xff]  ;;  %v720_v29 = vld [vmem:[#allocation10 + $0x8] sm:$0xff]  ;;  %v5055_v6 = vsub.s32 %v931_v1, %v933_v2 }
  0xca   : > { %3986 = vmatprep.subr.mxu1 %v4620_v0  ;;  %3951 = vmatprep.subr.mxu0 %v4620_v0  ;;  %v627_v30 = vld [vmem:[#allocation8 + $0x8] sm:$0xff]  ;;  %v719_v31 = vld [vmem:[#allocation10] sm:$0xff]  ;;  %v623_v34 = vld [vmem:[%s529_s1] sm:$0xff] }
  0xcb   : > { %3987 = vmatpush3.msra.mxu1 %v730_v9  ;;  %3952 = vmatpush3.msra.mxu0 %v637_v10  ;;  %v626_v32 = vld [vmem:[#allocation8] sm:$0xff]  ;;  %v3774_v35 = vld [vmem:[%s5533_s6] ss:$0 sm:$0xff]  ;;  %v827_v43 = vld [vmem:[#allocation11 + $0x78] sm:$0xff] }
  0xcc   : > { %3988 = vmatprep.subr.mxu1 %v4620_v0  ;;  %3953 = vmatprep.subr.mxu0 %v4620_v0  ;;  %v4985_v33 = vld [vmem:[%s538_s20] sm:$0xff]  ;;  %v3773_v37 = vld [vmem:[%s5531_s4] ss:$0 sm:$0xff]  ;;  %v823_v47 = vld [vmem:[#allocation11 + $0x58] sm:$0xff] }
  0xcd   : > { %3989 = vmatpush3.msra.mxu1 %v729_v11  ;;  %3954 = vmatpush3.msra.mxu0 %v636_v12  ;;  %v826_v44 = vld [vmem:[#allocation11 + $0x70] sm:$0xff]  ;;  %v825_v45 = vld [vmem:[#allocation11 + $0x68] sm:$0xff]  ;;  %v824_v46 = vld [vmem:[#allocation11 + $0x60] sm:$0xff] }
  0xce   : > { %3990 = vmatprep.subr.mxu1 %v4620_v0  ;;  %3955 = vmatprep.subr.mxu0 %v4620_v0  ;;  %v822_v48 = vld [vmem:[#allocation11 + $0x50] sm:$0xff]  ;;  %v821_v49 = vld [vmem:[#allocation11 + $0x48] sm:$0xff]  ;;  %v820_v50 = vld [vmem:[#allocation11 + $0x40] sm:$0xff] }
  0xcf   : > { %3991 = vmatpush3.msra.mxu1 %v728_v13  ;;  %3956 = vmatpush3.msra.mxu0 %v635_v14  ;;  %v819_v51 = vld [vmem:[#allocation11 + $0x38] sm:$0xff]  ;;  %v818_v52 = vld [vmem:[#allocation11 + $0x30] sm:$0xff]  ;;  %v817_v53 = vld [vmem:[#allocation11 + $0x28] sm:$0xff]  ;;  %v5059_v13 = vsub.s32 %v995_v5, %v933_v2 }
  0xd0   : > { %3992 = vmatprep.subr.mxu1 %v4620_v0  ;;  %3957 = vmatprep.subr.mxu0 %v4620_v0  ;;  %v816_v54 = vld [vmem:[#allocation11 + $0x20] sm:$0xff]  ;;  %v815_v55 = vld [vmem:[#allocation11 + $0x18] sm:$0xff]  ;;  %v814_v56 = vld [vmem:[#allocation11 + $0x10] sm:$0xff] }
  0xd1   : > { %3993 = vmatpush3.msra.mxu1 %v727_v15  ;;  %3958 = vmatpush3.msra.mxu0 %v634_v16  ;;  %v813_v57 = vld [vmem:[#allocation11 + $0x8] sm:$0xff]  ;;  %v812_v58 = vld [vmem:[#allocation11] sm:$0xff] }
  0xd2   : > { %3994 = vmatprep.subr.mxu1 %v4620_v0  ;;  %3959 = vmatprep.subr.mxu0 %v4620_v0 }
  0xd3   : > { %3995 = vmatpush3.msra.mxu1 %v726_v17  ;;  %3960 = vmatpush3.msra.mxu0 %v633_v18 }
  0xd4   : > { %3996 = vmatprep.subr.mxu1 %v4620_v0  ;;  %3961 = vmatprep.subr.mxu0 %v4620_v0 }
  0xd5   : > { %3997 = vmatpush3.msra.mxu1 %v725_v19  ;;  %3962 = vmatpush3.msra.mxu0 %v632_v20 }
  0xd6   : > { %3998 = vmatprep.subr.mxu1 %v4620_v0  ;;  %3963 = vmatprep.subr.mxu0 %v4620_v0 }
  0xd7   : > { %3999 = vmatpush3.msra.mxu1 %v724_v21  ;;  %3964 = vmatpush3.msra.mxu0 %v631_v22 }
  0xd8   : > { %4000 = vmatprep.subr.mxu1 %v4620_v0  ;;  %3965 = vmatprep.subr.mxu0 %v4620_v0 }
  0xd9   : > { %4001 = vmatpush3.msra.mxu1 %v723_v23  ;;  %3966 = vmatpush3.msra.mxu0 %v630_v24 }
  0xda   : > { %4002 = vmatprep.subr.mxu1 %v4620_v0  ;;  %3967 = vmatprep.subr.mxu0 %v4620_v0 }
  0xdb   : > { %4003 = vmatpush3.msra.mxu1 %v722_v25  ;;  %3968 = vmatpush3.msra.mxu0 %v629_v26 }
  0xdc   : > { %4004 = vmatprep.subr.mxu1 %v4620_v0  ;;  %3969 = vmatprep.subr.mxu0 %v4620_v0 }
  0xdd   : > { %4005 = vmatpush3.msra.mxu1 %v721_v27  ;;  %3970 = vmatpush3.msra.mxu0 %v628_v28 }
  0xde   : > { %4006 = vmatprep.subr.mxu1 %v4620_v0  ;;  %3971 = vmatprep.subr.mxu0 %v4620_v0 }
  0xdf   : > { %4007 = vmatpush3.msra.mxu1 %v720_v29  ;;  %3972 = vmatpush3.msra.mxu0 %v627_v30 }
  0xe0   : > { %4008 = vmatprep.subr.mxu1 %v4620_v0  ;;  %3973 = vmatprep.subr.mxu0 %v4620_v0 }
  0xe1   : > { %4009 = vmatpush3.msra.mxu1 %v719_v31  ;;  %3974 = vmatpush3.msra.mxu0 %v626_v32 }
  0xe2   : > { %4011 = vmatmul.mubr.f32.vlgmr.msra.gmra.mxu1 %v4985_v33  ;;  %3976 = vmatmul.mubr.f32.vlgmr.msra.gmra.mxu0 %v623_v34 }
  0xe3   : > { %4048 = vmatprep.subr.mxu1 %v4620_v0  ;;  %4050 = vmatprep.mubr.msk.f32.mxu1 %vm4621_vm0, %v4620_v0 }
  0xe4   : > { %4013 = vmatprep.subr.mxu0 %v4620_v0  ;;  %4045 = vmatprep.mubr.msk.f32.mxu0 %vm4621_vm0, %v4620_v0 }
  0xe5   : > { %4014 = vmatpush3.msra.mxu0 %v827_v43 }
  0xe6   : > { %4015 = vmatprep.subr.mxu0 %v4620_v0 }
  0xe7   : > { %4016 = vmatpush3.msra.mxu0 %v826_v44 }
  0xe8   : > { %4017 = vmatprep.subr.mxu0 %v4620_v0 }
  0xe9   : > { %4018 = vmatpush3.msra.mxu0 %v825_v45 }
  0xea   : > { %4019 = vmatprep.subr.mxu0 %v4620_v0 }
  0xeb   : > { %4020 = vmatpush3.msra.mxu0 %v824_v46 }
  0xec   : > { %4021 = vmatprep.subr.mxu0 %v4620_v0 }
  0xed   : > { %4022 = vmatpush3.msra.mxu0 %v823_v47 }
  0xee   : > { %4023 = vmatprep.subr.mxu0 %v4620_v0 }
  0xef   : > { %4024 = vmatpush3.msra.mxu0 %v822_v48 }
  0xf0   : > { %4025 = vmatprep.subr.mxu0 %v4620_v0 }
  0xf1   : > { %4026 = vmatpush3.msra.mxu0 %v821_v49 }
  0xf2   : > { %4027 = vmatprep.subr.mxu0 %v4620_v0 }
  0xf3   : > { %4028 = vmatpush3.msra.mxu0 %v820_v50 }
  0xf4   : > { %4029 = vmatprep.subr.mxu0 %v4620_v0 }
  0xf5   : > { %4030 = vmatpush3.msra.mxu0 %v819_v51 }
  0xf6   : > { %4031 = vmatprep.subr.mxu0 %v4620_v0 }
  0xf7   : > { %4032 = vmatpush3.msra.mxu0 %v818_v52 }
  0xf8   : > { %4033 = vmatprep.subr.mxu0 %v4620_v0 }
  0xf9   : > { %4034 = vmatpush3.msra.mxu0 %v817_v53 }
  0xfa   : > { %4035 = vmatprep.subr.mxu0 %v4620_v0 }
  0xfb   : > { %4036 = vmatpush3.msra.mxu0 %v816_v54 }
  0xfc   : > { %4037 = vmatprep.subr.mxu0 %v4620_v0 }
  0xfd   : > { %4038 = vmatpush3.msra.mxu0 %v815_v55 }
  0xfe   : > { %4039 = vmatprep.subr.mxu0 %v4620_v0 }
  0xff   : > { %4040 = vmatpush3.msra.mxu0 %v814_v56 }
 0x100   : > { %4041 = vmatprep.subr.mxu0 %v4620_v0 }
 0x101   : > { %4042 = vmatpush3.msra.mxu0 %v813_v57 }
 0x102   : > { %4043 = vmatprep.subr.mxu0 %v4620_v0 }
 0x103   : > { %4044 = vmatpush3.msra.mxu0 %v812_v58 }
 0x104   : > { %4046 = vmatmul.mubr.f32.vlgmr.msra.gmra.mxu0 %v4985_v33  ;;  %4128 = vmatprep.subr.mxu0 %v4620_v0 }
 0x105   : > { %4160 = vmatprep.mubr.msk.f32.mxu0 %vm4621_vm0, %v4620_v0 }
 0x1a2   : > { %v808_v36 = vpop.f32.mrf.mxu1  ;;  %v715_v38 = vpop.f32.mrf.mxu0 }
 0x1a3   : > { %v5004_v39 = vadd.f32 %v3774_v35, %v808_v36  ;;  %v5006_v42 = vadd.f32 %v3773_v37, %v715_v38 }
 0x1a4   : > { %v4012_v40 = vpop.f32.mrf.mxu1  ;;  %v3977_v41 = vpop.f32.mrf.mxu0 }
 0x1a5   : > { %1206 = vrot.lane.b32.xlu1 %v5004_v39, %s4622_s7  ;;  %1200 = vrot.lane.b32.xlu0 %v5004_v39, %s4623_s21 }
 0x1a9   : > { %1203 = vrot.lane.b32.xlu0 %v5004_v39, %s4624_s11  ;;  %906 = vrot.lane.b32.xlu1 %v5006_v42, %s4623_s21 }
 0x1ad   : > { %909 = vrot.lane.b32.xlu0 %v5006_v42, %s4624_s11  ;;  %912 = vrot.lane.b32.xlu1 %v5006_v42, %s4622_s7 }
 0x1b1   : > { %1209 = vrot.lane.b32.xlu0 %v5004_v39, %s4625_s23  ;;  %1212 = vrot.lane.b32.xlu1 %v5004_v39, %s4626_s27 }
 0x1b5   : > { %1215 = vrot.lane.b32.xlu0 %v5004_v39, %s4627_s26  ;;  %1218 = vrot.lane.b32.xlu1 %v5004_v39, %s4628_s17 }
 0x1b9   : > { %915 = vrot.lane.b32.xlu0 %v5006_v42, %s4625_s23  ;;  %918 = vrot.lane.b32.xlu1 %v5006_v42, %s4626_s27 }
 0x1bd   : > { %921 = vrot.lane.b32.xlu0 %v5006_v42, %s4627_s26  ;;  %924 = vrot.lane.b32.xlu1 %v5006_v42, %s4628_s17 }
 0x217   : > { %v1207_v3 = vpop.permute.xlu1 %1206  ;;  %v1201_v4 = vpop.permute.xlu0 %1200 }
 0x218   : > { %v1237_v7 = vcombine.low %v1201_v4, %v1207_v3  ;;  %v1238_v8 = vcombine.high %v1201_v4, %v1207_v3 }
 0x21a   : > { %v1245_v14 = vrot.slane %v1237_v7, %v5055_v6  ;;  %v1252_v15 = vrot.slane %v1238_v8, %v5055_v6 }
 0x21b   : > { %v1204_v9 = vpop.permute.xlu0 %1203  ;;  %v907_v10 = vpop.permute.xlu1 %906 }
 0x21c   : > { %v1221_v11 = vcombine.low %v5004_v39, %v1204_v9  ;;  %v1222_v12 = vcombine.high %v5004_v39, %v1204_v9 }
 0x21e   : > { %v1229_v16 = vrot.slane %v1221_v11, %v5055_v6  ;;  %v1236_v17 = vrot.slane %v1222_v12, %v5055_v6 }
 0x21f   : > { %v910_v18 = vpop.permute.xlu0 %909  ;;  %v913_v19 = vpop.permute.xlu1 %912 }
 0x220   : > { %v1285_v20 = vcombine.low %v1229_v16, %v1245_v14  ;;  %v1286_v21 = vcombine.high %v1229_v16, %v1245_v14  ;;  %v1301_v22 = vcombine.low %v1236_v17, %v1252_v15  ;;  %v1302_v23 = vcombine.high %v1236_v17, %v1252_v15 }
 0x221   : > { %v927_v24 = vcombine.low %v5006_v42, %v910_v18  ;;  %v928_v25 = vcombine.high %v5006_v42, %v910_v18  ;;  %v943_v26 = vcombine.low %v907_v10, %v913_v19  ;;  %v944_v27 = vcombine.high %v907_v10, %v913_v19 }
 0x222   : > { %v1293_v28 = vrot.slane %v1285_v20, %v5059_v13  ;;  %v1300_v29 = vrot.slane %v1286_v21, %v5059_v13  ;;  %v1309_v30 = vrot.slane %v1301_v22, %v5059_v13  ;;  %v1316_v31 = vrot.slane %v1302_v23, %v5059_v13 }
 0x223   : > { %v935_v32 = vrot.slane %v927_v24, %v5055_v6  ;;  %v942_v33 = vrot.slane %v928_v25, %v5055_v6  ;;  %v951_v34 = vrot.slane %v943_v26, %v5055_v6  ;;  %v958_v35 = vrot.slane %v944_v27, %v5055_v6  ;;  %v1210_v36 = vpop.permute.xlu0 %1209  ;;  %v1213_v37 = vpop.permute.xlu1 %1212 }
 0x224   : > { %v3784_v38 = vcombine.low %v1293_v28, %v1300_v29  ;;  %v3786_v39 = vcombine.high %v1293_v28, %v1300_v29  ;;  %v3788_v40 = vcombine.low %v1309_v30, %v1316_v31  ;;  %v3790_v41 = vcombine.high %v1309_v30, %v1316_v31 }
 0x225   : > { %v991_v42 = vcombine.low %v935_v32, %v951_v34  ;;  %v992_v43 = vcombine.high %v935_v32, %v951_v34  ;;  %v1007_v44 = vcombine.low %v942_v33, %v958_v35  ;;  %v1008_v45 = vcombine.high %v942_v33, %v958_v35 }
 0x226   : > { %v5076_v46 = vrot.slane %v3784_v38, %v5055_v6  ;;  %v5079_v47 = vrot.slane %v3786_v39, %v5055_v6  ;;  %v5082_v48 = vrot.slane %v3788_v40, %v5055_v6  ;;  %v5085_v49 = vrot.slane %v3790_v41, %v5055_v6 }
 0x227   : > { %v999_v50 = vrot.slane %v991_v42, %v5059_v13  ;;  %v1006_v51 = vrot.slane %v992_v43, %v5059_v13  ;;  %v1015_v52 = vrot.slane %v1007_v44, %v5059_v13  ;;  %v1022_v53 = vrot.slane %v1008_v45, %v5059_v13  ;;  %v1216_v54 = vpop.permute.xlu0 %1215  ;;  %v1219_v55 = vpop.permute.xlu1 %1218 }
 0x228   : > { %v1421_v56 = vcombine.low %v5076_v46, %v5079_v47  ;;  %v1453_v57 = vcombine.low %v5082_v48, %v5085_v49  ;;  %v1253_v62 = vcombine.low %v1210_v36, %v1216_v54  ;;  %v1254_v63 = vcombine.high %v1210_v36, %v1216_v54 }
 0x229   : > { %v3776_v58 = vcombine.low %v999_v50, %v1006_v51  ;;  %v3778_v59 = vcombine.high %v999_v50, %v1006_v51  ;;  %v3780_v60 = vcombine.low %v1015_v52, %v1022_v53  ;;  %v3782_v61 = vcombine.high %v1015_v52, %v1022_v53 }
 0x22a   : > { %v1269_v1 = vcombine.low %v1213_v37, %v1219_v55  ;;  %v1270_v2 = vcombine.high %v1213_v37, %v1219_v55  ;;  %v1261_v10 = vrot.slane %v1253_v62, %v5055_v6  ;;  %v1268_v11 = vrot.slane %v1254_v63, %v5055_v6 }
 0x22b   : > { %v5096_v3 = vrot.slane %v3776_v58, %v5055_v6  ;;  %v5099_v4 = vrot.slane %v3778_v59, %v5055_v6  ;;  %v5102_v5 = vrot.slane %v3780_v60, %v5055_v6  ;;  %v5105_v7 = vrot.slane %v3782_v61, %v5055_v6  ;;  %v916_v8 = vpop.permute.xlu0 %915  ;;  %v919_v9 = vpop.permute.xlu1 %918 }
 0x22c   : > { %v1277_v12 = vrot.slane %v1269_v1, %v5055_v6  ;;  %v1284_v14 = vrot.slane %v1270_v2, %v5055_v6  ;;  %v1429_v21 = vrot.slane %v1421_v56, %v5059_v13  ;;  %v1461_v22 = vrot.slane %v1453_v57, %v5059_v13 }
 0x22d   : > { %v1127_v15 = vcombine.low %v5096_v3, %v5099_v4  ;;  %v1159_v16 = vcombine.low %v5102_v5, %v5105_v7  ;;  %v1422_v42 = vcombine.high %v5076_v46, %v5079_v47  ;;  %v1454_v43 = vcombine.high %v5082_v48, %v5085_v49 }
 0x22e   : > { %v1317_v17 = vcombine.low %v1261_v10, %v1277_v12  ;;  %v1318_v18 = vcombine.high %v1261_v10, %v1277_v12  ;;  %v1333_v19 = vcombine.low %v1268_v11, %v1284_v14  ;;  %v1334_v20 = vcombine.high %v1268_v11, %v1284_v14 }
 0x22f   : > { %v922_v23 = vpop.permute.xlu0 %921  ;;  %v925_v24 = vpop.permute.xlu1 %924  ;;  %v1135_v25 = vrot.slane %v1127_v15, %v5059_v13  ;;  %v1167_v26 = vrot.slane %v1159_v16, %v5059_v13  ;;  %v1485_v31 = vcombine.low %v1429_v21, %v1461_v22  ;;  %v1128_v44 = vcombine.high %v5096_v3, %v5099_v4 }
 0x230   : > { %v1325_v27 = vrot.slane %v1317_v17, %v5059_v13  ;;  %v1332_v28 = vrot.slane %v1318_v18, %v5059_v13  ;;  %v1341_v29 = vrot.slane %v1333_v19, %v5059_v13  ;;  %v1348_v30 = vrot.slane %v1334_v20, %v5059_v13 }
 0x231   : > { %v959_v32 = vcombine.low %v916_v8, %v922_v23  ;;  %v960_v33 = vcombine.high %v916_v8, %v922_v23  ;;  %v975_v34 = vcombine.low %v919_v9, %v925_v24  ;;  %4049 = vmatpush3.xpose.msk.msra.mxu1 %vm1787_vm1, %v1485_v31  ;;  %v976_v40 = vcombine.high %v919_v9, %v925_v24 }
 0x232   : > { %v3785_v35 = vcombine.low %v1325_v27, %v1332_v28  ;;  %v3787_v36 = vcombine.high %v1325_v27, %v1332_v28  ;;  %v3789_v37 = vcombine.low %v1341_v29, %v1348_v30  ;;  %v3791_v45 = vcombine.high %v1341_v29, %v1348_v30  ;;  %4053 = vmatprep.subr.mxu1 %v4620_v0 }
 0x233   : > { %v967_v38 = vrot.slane %v959_v32, %v5055_v6  ;;  %v974_v39 = vrot.slane %v960_v33, %v5055_v6  ;;  %v983_v41 = vrot.slane %v975_v34, %v5055_v6  ;;  %v990_v50 = vrot.slane %v976_v40, %v5055_v6 }
 0x234   : > { %v1191_v53 = vcombine.low %v1135_v25, %v1167_v26  ;;  %v1160_v54 = vcombine.high %v5102_v5, %v5105_v7  ;;  %v1372_v55 = vrot.slane %v3785_v35, %v5055_v6  ;;  %v1388_v46 = vrot.slane %v3787_v36, %v5055_v6 }
 0x235   : > { %v1023_v51 = vcombine.low %v967_v38, %v983_v41  ;;  %v1024_v52 = vcombine.high %v967_v38, %v983_v41  ;;  %v1404_v47 = vrot.slane %v3789_v37, %v5055_v6  ;;  %v1039_v56 = vcombine.low %v974_v39, %v990_v50 }
 0x236   : > { %v1040_v57 = vcombine.high %v974_v39, %v990_v50  ;;  %4051 = vmatmul.mubr.msk.f32.vlgmr.msra.gmra.mxu1 %vm1787_vm1, %v1191_v53  ;;  %v1420_v58 = vrot.slane %v3791_v45, %v5055_v6  ;;  %v1486_v59 = vcombine.high %v1429_v21, %v1461_v22  ;;  %v1436_v60 = vrot.slane %v1422_v42, %v5059_v13  ;;  %v901_v42 = vpop.f32.mrf.mxu0 }
 0x237   : > { %v1031_v48 = vrot.slane %v1023_v51, %v5059_v13  ;;  %v1038_v49 = vrot.slane %v1024_v52, %v5059_v13  ;;  %4055 = vmatprep.mubr.msk.f32.mxu1 %vm4621_vm0, %v4620_v0  ;;  %v1468_v61 = vrot.slane %v1454_v43, %v5059_v13  ;;  %v1047_v62 = vrot.slane %v1039_v56, %v5059_v13 }
 0x238   : > { %v1054_v63 = vrot.slane %v1040_v57, %v5059_v13  ;;  %4054 = vmatpush3.xpose.msk.msra.mxu1 %vm1787_vm1, %v1486_v59  ;;  %v1192_v3 = vcombine.high %v1135_v25, %v1167_v26  ;;  %v1142_v4 = vrot.slane %v1128_v44, %v5059_v13  ;;  %v1174_v5 = vrot.slane %v1160_v54, %v5059_v13  ;;  %v4047_v43 = vpop.f32.mrf.mxu0  ;;  %v625_v44 = vld [vmem:[%s547_s13] sm:$0xff]  ;;  %s5603_s13 = sld [smem:[#allocation27_spill]] }
 0x239   : > { %v3777_v1 = vcombine.low %v1031_v48, %v1038_v49  ;;  %v3779_v2 = vcombine.high %v1031_v48, %v1038_v49  ;;  %4058 = vmatprep.subr.mxu1 %v4620_v0  ;;  %v1437_v11 = vcombine.low %v1372_v55, %v1388_v46  ;;  %v1469_v12 = vcombine.low %v1404_v47, %v1420_v58 }
 0x23a   : > { %v3781_v9 = vcombine.low %v1047_v62, %v1054_v63  ;;  %v3783_v10 = vcombine.high %v1047_v62, %v1054_v63  ;;  %v1487_v14 = vcombine.low %v1436_v60, %v1468_v61  ;;  %v1193_v19 = vcombine.low %v1142_v4, %v1174_v5 }
 0x23b   : > { %v1078_v7 = vrot.slane %v3777_v1, %v5055_v6  ;;  %v1094_v8 = vrot.slane %v3779_v2, %v5055_v6  ;;  %4056 = vmatmul.mubr.msk.f32.vlgmr.msra.gmra.mxu1 %vm1787_vm1, %v1192_v3  ;;  %v1488_v20 = vcombine.high %v1436_v60, %v1468_v61  ;;  %v1445_v21 = vrot.slane %v1437_v11, %v5059_v13 }
 0x23c   : > { %v1110_v15 = vrot.slane %v3781_v9, %v5055_v6  ;;  %v1126_v16 = vrot.slane %v3783_v10, %v5055_v6  ;;  %4059 = vmatpush3.xpose.msk.msra.mxu1 %vm1787_vm1, %v1487_v14  ;;  %4060 = vmatprep.mubr.msk.f32.mxu1 %vm4621_vm0, %v4620_v0  ;;  %v1477_v22 = vrot.slane %v1469_v12, %v5059_v13  ;;  %vm2404_vm2 = vcmp.eq.f32.partialorder %v625_v44, 0.0 }
 0x23d   : > { %v1143_v17 = vcombine.low %v1078_v7, %v1094_v8  ;;  %4063 = vmatprep.subr.mxu1 %v4620_v0  ;;  %v1194_v25 = vcombine.high %v1142_v4, %v1174_v5  ;;  %v1438_v26 = vcombine.high %v1372_v55, %v1388_v46  ;;  %v1470_v27 = vcombine.high %v1404_v47, %v1420_v58 }
 0x23e   : > { %v1175_v18 = vcombine.low %v1110_v15, %v1126_v16  ;;  %v1489_v28 = vcombine.low %v1445_v21, %v1477_v22  ;;  %v1144_v30 = vcombine.high %v1078_v7, %v1094_v8  ;;  %v1176_v31 = vcombine.high %v1110_v15, %v1126_v16  ;;  %p5605_p1 = scmp.ne.s32.totalorder %s5603_s13, 0 }
 0x23f   : > { %4061 = vmatmul.mubr.msk.f32.vlgmr.msra.gmra.mxu1 %vm1787_vm1, %v1193_v19  ;;  %v1151_v23 = vrot.slane %v1143_v17, %v5059_v13  ;;  %v1490_v32 = vcombine.high %v1445_v21, %v1477_v22  ;;  %v1452_v33 = vrot.slane %v1438_v26, %v5059_v13  ;;  %v1484_v34 = vrot.slane %v1470_v27, %v5059_v13 }
 0x240   : > { %v1183_v24 = vrot.slane %v1175_v18, %v5059_v13  ;;  %4064 = vmatpush3.xpose.msk.msra.mxu1 %vm1787_vm1, %v1488_v20  ;;  %4065 = vmatprep.mubr.msk.f32.mxu1 %vm4621_vm0, %v4620_v0  ;;  %v1158_v36 = vrot.slane %v1144_v30, %v5059_v13  ;;  %v1190_v37 = vrot.slane %v1176_v31, %v5059_v13 }
 0x241   : > { %4068 = vmatprep.subr.mxu1 %v4620_v0  ;;  %v1491_v38 = vcombine.low %v1452_v33, %v1484_v34  ;;  %v1492_v40 = vcombine.high %v1452_v33, %v1484_v34 }
 0x242   : > { %v1195_v29 = vcombine.low %v1151_v23, %v1183_v24  ;;  %v1196_v35 = vcombine.high %v1151_v23, %v1183_v24  ;;  %v1197_v39 = vcombine.low %v1158_v36, %v1190_v37  ;;  %v1198_v41 = vcombine.high %v1158_v36, %v1190_v37  ;;  %v3775_v24 = vld [vmem:[%s5535_s8] ss:$0 sm:$0xff] }
 0x243   : > { %4066 = vmatmul.mubr.msk.f32.vlgmr.msra.gmra.mxu1 %vm1787_vm1, %v1194_v25  ;;  %v5232_v25 = vadd.f32 %v3775_v24, %v901_v42 }
 0x244   : > { %4069 = vmatpush3.xpose.msk.msra.mxu1 %vm1787_vm1, %v1489_v28  ;;  %4070 = vmatprep.mubr.msk.f32.mxu1 %vm4621_vm0, %v4620_v0 }
 0x245   : > { %4073 = vmatprep.subr.mxu1 %v4620_v0 }
 0x247   : > { %4071 = vmatmul.mubr.msk.f32.vlgmr.msra.gmra.mxu1 %vm1787_vm1, %v1195_v29 }
 0x248   : > { %4074 = vmatpush3.xpose.msk.msra.mxu1 %vm1787_vm1, %v1490_v32  ;;  %4075 = vmatprep.mubr.msk.f32.mxu1 %vm4621_vm0, %v4620_v0 }
 0x249   : > { %4078 = vmatprep.subr.mxu1 %v4620_v0 }
 0x24b   : > { %4076 = vmatmul.mubr.msk.f32.vlgmr.msra.gmra.mxu1 %vm1787_vm1, %v1196_v35 }
 0x24c   : > { %4079 = vmatpush3.xpose.msk.msra.mxu1 %vm1787_vm1, %v1491_v38  ;;  %4080 = vmatprep.mubr.msk.f32.mxu1 %vm4621_vm0, %v4620_v0 }
 0x24d   : > { %4083 = vmatprep.subr.mxu1 %v4620_v0 }
 0x24f   : > { %4081 = vmatmul.mubr.msk.f32.vlgmr.msra.gmra.mxu1 %vm1787_vm1, %v1197_v39 }
 0x250   : > { %4084 = vmatpush3.xpose.msk.msra.mxu1 %vm1787_vm1, %v1492_v40  ;;  %4085 = vmatprep.mubr.msk.f32.mxu1 %vm4621_vm0, %v4620_v0 }
 0x251   : > { %4088 = vmatprep.subr.mxu1 %v4620_v0 }
 0x253   : > { %4086 = vmatmul.mubr.msk.f32.vlgmr.msra.gmra.mxu1 %vm1787_vm1, %v1198_v41 }
 0x254   : > { %4090 = vmatprep.mubr.msk.f32.mxu1 %vm4621_vm0, %v4620_v0 }
 0x2f6   : > { %v1860_v45 = vpop.f32.mrf.mxu1 }
 0x2f7   : > { %v2396_v50 = vmul.f32 0.25, %v1860_v45 }
 0x2f8   : > { %v4052_v51 = vpop.f32.mrf.mxu1 }
 0x2f9   : > { %v2407_v52 = vsel %vm2404_vm2, -1e+09, %v2396_v50 }
 0x2fa   : > { %v2416_v53 = vsel %vm2415_vm3, %v2407_v52, -inf }
 0x2fb   : > { %2417 = vmax.xlane.f32.xlu0 %v2416_v53  ;;  %v1936_v54 = vpop.f32.mrf.mxu1 }
 0x2fc   : > { %v2397_v55 = vmul.f32 0.25, %v1936_v54 }
 0x2fd   : > { %v4057_v46 = vpop.f32.mrf.mxu1 }
 0x2fe   : > { %v2408_v47 = vsel %vm2404_vm2, -1e+09, %v2397_v55 }
 0x2ff   : > { %v2012_v48 = vpop.f32.mrf.mxu1  ;;  %v2419_v49 = vsel %vm2415_vm3, %v2408_v47, -inf }
 0x300   : > { %v2398_v56 = vmul.f32 0.25, %v2012_v48  ;;  %2420 = vmax.xlane.f32.xlu1 %v2419_v49 }
 0x301   : > { %v4062_v57 = vpop.f32.mrf.mxu1 }
 0x302   : > { %v2409_v58 = vsel %vm2404_vm2, -1e+09, %v2398_v56 }
 0x303   : > { %v2088_v59 = vpop.f32.mrf.mxu1  ;;  %v2422_v60 = vsel %vm2415_vm3, %v2409_v58, -inf }
 0x304   : > { %v2399_v61 = vmul.f32 0.25, %v2088_v59  ;;  %2423 = vmax.xlane.f32.xlu0 %v2422_v60 }
 0x305   : > { %v4067_v62 = vpop.f32.mrf.mxu1 }
 0x306   : > { %v2410_v63 = vsel %vm2404_vm2, -1e+09, %v2399_v61 }
 0x307   : > { %v2164_v1 = vpop.f32.mrf.mxu1  ;;  %v2425_v2 = vsel %vm2415_vm3, %v2410_v63, -inf }
 0x308   : > { %v2400_v3 = vmul.f32 0.25, %v2164_v1  ;;  %2426 = vmax.xlane.f32.xlu0 %v2425_v2 }
 0x309   : > { %v4072_v4 = vpop.f32.mrf.mxu1 }
 0x30a   : > { %v5210_v5 = vsel %vm2404_vm2, -1e+09, %v2400_v3 }
 0x30b   : > { %v2240_v7 = vpop.f32.mrf.mxu1  ;;  %v2428_v8 = vsel %vm2415_vm3, %v5210_v5, -inf }
 0x30c   : > { %v2401_v9 = vmul.f32 0.25, %v2240_v7  ;;  %2429 = vmax.xlane.f32.xlu1 %v2428_v8 }
 0x30d   : > { %v4077_v10 = vpop.f32.mrf.mxu1 }
 0x30e   : > { %v5215_v11 = vsel %vm2404_vm2, -1e+09, %v2401_v9 }
 0x30f   : > { %v2316_v12 = vpop.f32.mrf.mxu1  ;;  %v2431_v14 = vsel %vm2415_vm3, %v5215_v11, -inf }
 0x310   : > { %v2402_v15 = vmul.f32 0.25, %v2316_v12  ;;  %2432 = vmax.xlane.f32.xlu0 %v2431_v14 }
 0x311   : > { %v4082_v16 = vpop.f32.mrf.mxu1 }
 0x312   : > { %v5220_v17 = vsel %vm2404_vm2, -1e+09, %v2402_v15 }
 0x313   : > { %v2392_v18 = vpop.f32.mrf.mxu1  ;;  %v2434_v19 = vsel %vm2415_vm3, %v5220_v17, -inf }
 0x314   : > { %v2403_v20 = vmul.f32 0.25, %v2392_v18  ;;  %2435 = vmax.xlane.f32.xlu1 %v2434_v19 }
 0x315   : > { %v4087_v21 = vpop.f32.mrf.mxu1 }
 0x316   : > { %v5225_v22 = vsel %vm2404_vm2, -1e+09, %v2403_v20 }
 0x317   : > { %v2437_v23 = vsel %vm2415_vm3, %v5225_v22, -inf }
 0x318   : > { %2438 = vmax.xlane.f32.xlu0 %v2437_v23 }
 0x325   : > { %1497 = vrot.lane.b32.xlu1 %v5232_v25, %s4624_s11 }
 0x329   : > { %1500 = vrot.lane.b32.xlu1 %v5232_v25, %s4622_s7 }
 0x32d   : > { %1503 = vrot.lane.b32.xlu1 %v5232_v25, %s4625_s23 }
 0x32e   : > { %1494 = vrot.lane.b32.xlu0 %v5232_v25, %s4623_s21 }
 0x384   : > { %v2418_v26 = vpop.xlane.xlu0 %2417 }
 0x385   : > { %v2440_v27 = vsub.f32 %v2407_v52, %v2418_v26 }
 0x387   : > { %v2448_v28 = vmul.f32 1.442695, %v2440_v27 }
 0x389   : > { %4280 = vpow2.f32 %v2448_v28  ;;  %v2421_v29 = vpop.xlane.xlu1 %2420 }
 0x38a   : > { %v2441_v30 = vsub.f32 %v2408_v47, %v2421_v29 }
 0x38c   : > { %v2450_v31 = vmul.f32 1.442695, %v2441_v30 }
 0x38d   : > { %v2424_v32 = vpop.xlane.xlu0 %2423 }
 0x38e   : > { %4282 = vpow2.f32 %v2450_v31  ;;  %v2442_v33 = vsub.f32 %v2409_v58, %v2424_v32 }
 0x390   : > { %v2452_v34 = vmul.f32 1.442695, %v2442_v33 }
 0x391   : > { %v2427_v35 = vpop.xlane.xlu0 %2426 }
 0x392   : > { %4284 = vpow2.f32 %v2452_v34  ;;  %v2443_v36 = vsub.f32 %v2410_v63, %v2427_v35 }
 0x394   : > { %v2454_v37 = vmul.f32 1.442695, %v2443_v36 }
 0x395   : > { %v2430_v40 = vpop.xlane.xlu1 %2429 }
 0x396   : > { %v5242_v38 = vpop.eup %4280  ;;  %4286 = vpow2.f32 %v2454_v37  ;;  %v2444_v33 = vsub.f32 %v5210_v5, %v2430_v40 }
 0x397   : > { %v2464_v39 = vsel %vm2415_vm3, %v5242_v38, 0.0 }
 0x398   : > { %2465 = vadd.xlane.f32.xlu1 %v2464_v39  ;;  %v2456_v34 = vmul.f32 1.442695, %v2444_v33 }
 0x399   : > { %v2433_v43 = vpop.xlane.xlu0 %2432 }
 0x39a   : > { %v2445_v35 = vsub.f32 %v5215_v11, %v2433_v43  ;;  %4288 = vpow2.f32 %v2456_v34 }
 0x39b   : > { %v5246_v41 = vpop.eup %4282 }
 0x39c   : > { %v2467_v42 = vsel %vm2415_vm3, %v5246_v41, 0.0  ;;  %v2458_v36 = vmul.f32 1.442695, %v2445_v35 }
 0x39d   : > { %v2436_v44 = vpop.xlane.xlu1 %2435  ;;  %2468 = vadd.xlane.f32.xlu0 %v2467_v42 }
 0x39e   : > { %v2446_v37 = vsub.f32 %v5220_v17, %v2436_v44  ;;  %4290 = vpow2.f32 %v2458_v36 }
 0x39f   : > { %v5250_v45 = vpop.eup %4284 }
 0x3a0   : > { %v2470_v50 = vsel %vm2415_vm3, %v5250_v45, 0.0  ;;  %v2460_v39 = vmul.f32 1.442695, %v2446_v37 }
 0x3a1   : > { %v2439_v51 = vpop.xlane.xlu0 %2438  ;;  %2471 = vadd.xlane.f32.xlu1 %v2470_v50  ;;  %v1498_v52 = vpop.permute.xlu1 %1497 }
 0x3a2   : > { %v1515_v54 = vcombine.low %v5232_v25, %v1498_v52  ;;  %v1516_v55 = vcombine.high %v5232_v25, %v1498_v52  ;;  %v2447_v42 = vsub.f32 %v5225_v22, %v2439_v51  ;;  %4292 = vpow2.f32 %v2460_v39 }
 0x3a3   : > { %v5254_v53 = vpop.eup %4286 }
 0x3a4   : > { %v2473_v46 = vsel %vm2415_vm3, %v5254_v53, 0.0  ;;  %v1523_v57 = vrot.slane %v1515_v54, %v5055_v6  ;;  %v1530_v58 = vrot.slane %v1516_v55, %v5055_v6  ;;  %v2462_v50 = vmul.f32 1.442695, %v2447_v42 }
 0x3a5   : > { %v1501_v47 = vpop.permute.xlu1 %1500  ;;  %2474 = vadd.xlane.f32.xlu0 %v2473_v46  ;;  %v1495_v48 = vpop.permute.xlu0 %1494 }
 0x3a6   : > { %v1531_v49 = vcombine.low %v1495_v48, %v1501_v47  ;;  %v1532_v56 = vcombine.high %v1495_v48, %v1501_v47  ;;  %4294 = vpow2.f32 %v2462_v50 }
 0x3a7   : > { %v5293_v52 = vpop.eup %4288 }
 0x3a8   : > { %v1539_v59 = vrot.slane %v1531_v49, %v5055_v6  ;;  %v1546_v60 = vrot.slane %v1532_v56, %v5055_v6  ;;  %v2476_v54 = vsel %vm2415_vm3, %v5293_v52, 0.0 }
 0x3a9   : > { %v1504_v44 = vpop.permute.xlu1 %1503 }
 0x3aa   : > { %v1579_v61 = vcombine.low %v1523_v57, %v1539_v59  ;;  %v1580_v62 = vcombine.high %v1523_v57, %v1539_v59  ;;  %v1595_v63 = vcombine.low %v1530_v58, %v1546_v60  ;;  %v1596_v1 = vcombine.high %v1530_v58, %v1546_v60 }
 0x3ab   : > { %v5297_v5 = vpop.eup %4290 }
 0x3ac   : > { %v1587_v2 = vrot.slane %v1579_v61, %v5059_v13  ;;  %v1594_v3 = vrot.slane %v1580_v62, %v5059_v13  ;;  %v1603_v4 = vrot.slane %v1595_v63, %v5059_v13  ;;  %v1610_v7 = vrot.slane %v1596_v1, %v5059_v13 }
 0x3ad   : > { %v2479_v11 = vsel %vm2415_vm3, %v5297_v5, 0.0 }
 0x3ae   : > { %v3792_v8 = vcombine.low %v1587_v2, %v1594_v3  ;;  %v3794_v9 = vcombine.high %v1587_v2, %v1594_v3  ;;  %v3796_v10 = vcombine.low %v1603_v4, %v1610_v7  ;;  %v3798_v12 = vcombine.high %v1603_v4, %v1610_v7 }
 0x3af   : > { %v5301_v17 = vpop.eup %4292 }
 0x3b0   : > { %v1659_v14 = vrot.slane %v3792_v8, %v5055_v6  ;;  %v1675_v15 = vrot.slane %v3794_v9, %v5055_v6  ;;  %v1691_v16 = vrot.slane %v3796_v10, %v5055_v6  ;;  %v1707_v18 = vrot.slane %v3798_v12, %v5055_v6 }
 0x3b1   : > { %v2482_v22 = vsel %vm2415_vm3, %v5301_v17, 0.0 }
 0x3b2   : > { %1509 = vrot.lane.b32.xlu1 %v5232_v25, %s4627_s26  ;;  %v1715_v19 = vcombine.low %v1659_v14, %v1675_v15  ;;  %v1747_v20 = vcombine.low %v1691_v16, %v1707_v18  ;;  %v1716_v21 = vcombine.high %v1659_v14, %v1675_v15  ;;  %v1748_v23 = vcombine.high %v1691_v16, %v1707_v18 }
 0x3b3   : > { %v5305_v40 = vpop.eup %4294 }
 0x3b4   : > { %v1723_v24 = vrot.slane %v1715_v19, %v5059_v13  ;;  %v1755_v26 = vrot.slane %v1747_v20, %v5059_v13  ;;  %v5277_v27 = vrot.slane %v1716_v21, %v5059_v13  ;;  %v5280_v28 = vrot.slane %v1748_v23, %v5059_v13 }
 0x3b5   : > { %v2485_v43 = vsel %vm2415_vm3, %v5305_v40, 0.0 }
 0x3b6   : > { %v1779_v29 = vcombine.low %v1723_v24, %v1755_v26  ;;  %v1780_v30 = vcombine.high %v1723_v24, %v1755_v26  ;;  %v1781_v31 = vcombine.low %v5277_v27, %v5280_v28  ;;  %v1782_v32 = vcombine.high %v5277_v27, %v5280_v28 }
 0x3b8   : > { %4089 = vmatpush3.msra.mxu1 %v1779_v29 }
 0x3b9   : > { %4093 = vmatprep.subr.mxu1 %v4620_v0 }
 0x3bb   : > { %1506 = vrot.lane.b32.xlu0 %v5232_v25, %s4626_s27 }
 0x3d6   : > { %2477 = vadd.xlane.f32.xlu1 %v2476_v54 }
 0x3da   : > { %2480 = vadd.xlane.f32.xlu0 %v2479_v11 }
 0x3de   : > { %2483 = vadd.xlane.f32.xlu0 %v2482_v22 }
 0x3e2   : > { %2486 = vadd.xlane.f32.xlu0 %v2485_v43 }
 0x3e7   : > { %1512 = vrot.lane.b32.xlu1 %v5232_v25, %s4628_s17 }
 0x421   : > { %v2466_v51 = vpop.xlane.xlu1 %2465 }
 0x422   : > { %4296 = vrcp.f32 %v2466_v51 }
 0x426   : > { %v2469_v55 = vpop.xlane.xlu0 %2468 }
 0x427   : > { %4298 = vrcp.f32 %v2469_v55 }
 0x42a   : > { %v2472_v46 = vpop.xlane.xlu1 %2471 }
 0x42b   : > { %4300 = vrcp.f32 %v2472_v46 }
 0x42e   : > { %v2475_v48 = vpop.xlane.xlu0 %2474 }
 0x42f   : > { %v4297_v47 = vpop.eup %4296  ;;  %4302 = vrcp.f32 %v2475_v48 }
 0x430   : > { %v2489_v49 = vmul.f32 %v4297_v47, %v5242_v38 }
 0x432   : > { %4091 = vmatmul.mubr.msk.f32.vlgmr.msra.gmra.mxu1 %vm2415_vm3, %v2489_v49  ;;  %3524 = vst.msk [vmem:[%s5314_s3] sm:$0xff] %vm2415_vm3, %v2489_v49  ;;  %v1507_v59 = vpop.permute.xlu0 %1506 }
 0x433   : > { %4094 = vmatpush3.msra.mxu1 %v1780_v30  ;;  %4095 = vmatprep.mubr.msk.f32.mxu1 %vm4621_vm0, %v4620_v0 }
 0x434   : > { %4098 = vmatprep.subr.mxu1 %v4620_v0  ;;  %v4299_v25 = vpop.eup %4298 }
 0x435   : > { %v2491_v56 = vmul.f32 %v4299_v25, %v5246_v41 }
 0x437   : > { %4096 = vmatmul.mubr.msk.f32.vlgmr.msra.gmra.mxu1 %vm2415_vm3, %v2491_v56  ;;  %3525 = vst.msk [vmem:[%s5314_s3 + $0x8] sm:$0xff] %vm2415_vm3, %v2491_v56 }
 0x438   : > { %v4301_v38 = vpop.eup %4300  ;;  %4099 = vmatpush3.msra.mxu1 %v1781_v31  ;;  %4100 = vmatprep.mubr.msk.f32.mxu1 %vm4621_vm0, %v4620_v0 }
 0x439   : > { %4103 = vmatprep.subr.mxu1 %v4620_v0  ;;  %v2493_v57 = vmul.f32 %v4301_v38, %v5250_v45  ;;  %v1510_v45 = vpop.permute.xlu1 %1509 }
 0x43a   : > { %v1547_v61 = vcombine.low %v1504_v44, %v1510_v45  ;;  %v1548_v62 = vcombine.high %v1504_v44, %v1510_v45 }
 0x43b   : > { %4101 = vmatmul.mubr.msk.f32.vlgmr.msra.gmra.mxu1 %vm2415_vm3, %v2493_v57  ;;  %3526 = vst.msk [vmem:[%s5314_s3 + $0x10] sm:$0xff] %vm2415_vm3, %v2493_v57 }
 0x43c   : > { %v4303_v58 = vpop.eup %4302  ;;  %4104 = vmatpush3.msra.mxu1 %v1782_v32  ;;  %4105 = vmatprep.mubr.msk.f32.mxu1 %vm4621_vm0, %v4620_v0  ;;  %v1562_v4 = vrot.slane %v1548_v62, %v5055_v6 }
 0x43d   : > { %v2495_v41 = vmul.f32 %v4303_v58, %v5254_v53  ;;  %4108 = vmatprep.subr.mxu1 %v4620_v0  ;;  %v1555_v53 = vrot.slane %v1547_v61, %v5055_v6 }
 0x43f   : > { %4106 = vmatmul.mubr.msk.f32.vlgmr.msra.gmra.mxu1 %vm2415_vm3, %v2495_v41  ;;  %3527 = vst.msk [vmem:[%s5314_s3 + $0x18] sm:$0xff] %vm2415_vm3, %v2495_v41 }
 0x440   : > { %4110 = vmatprep.mubr.msk.f32.mxu1 %vm4621_vm0, %v4620_v0 }
 0x45f   : > { %v2478_v60 = vpop.xlane.xlu1 %2477 }
 0x460   : > { %4304 = vrcp.f32 %v2478_v60 }
 0x463   : > { %v1513_v63 = vpop.permute.xlu1 %1512  ;;  %v2481_v1 = vpop.xlane.xlu0 %2480 }
 0x464   : > { %v1563_v2 = vcombine.low %v1507_v59, %v1513_v63  ;;  %v1564_v3 = vcombine.high %v1507_v59, %v1513_v63  ;;  %4306 = vrcp.f32 %v2481_v1 }
 0x466   : > { %v1571_v7 = vrot.slane %v1563_v2, %v5055_v6  ;;  %v1578_v8 = vrot.slane %v1564_v3, %v5055_v6 }
 0x467   : > { %v2484_v9 = vpop.xlane.xlu0 %2483 }
 0x468   : > { %v1611_v10 = vcombine.low %v1555_v53, %v1571_v7  ;;  %v1612_v12 = vcombine.high %v1555_v53, %v1571_v7  ;;  %v1627_v14 = vcombine.low %v1562_v4, %v1578_v8  ;;  %v1628_v15 = vcombine.high %v1562_v4, %v1578_v8 }
 0x469   : > { %4308 = vrcp.f32 %v2484_v9 }
 0x46a   : > { %v1619_v16 = vrot.slane %v1611_v10, %v5059_v13  ;;  %v1626_v18 = vrot.slane %v1612_v12, %v5059_v13  ;;  %v1635_v19 = vrot.slane %v1627_v14, %v5059_v13  ;;  %v1642_v20 = vrot.slane %v1628_v15, %v5059_v13 }
 0x46b   : > { %v2487_v21 = vpop.xlane.xlu0 %2486 }
 0x46c   : > { %v3793_v23 = vcombine.low %v1619_v16, %v1626_v18  ;;  %v3795_v24 = vcombine.high %v1619_v16, %v1626_v18  ;;  %v3797_v26 = vcombine.low %v1635_v19, %v1642_v20  ;;  %v3799_v27 = vcombine.high %v1635_v19, %v1642_v20 }
 0x46d   : > { %v4305_v28 = vpop.eup %4304  ;;  %4310 = vrcp.f32 %v2487_v21 }
 0x46e   : > { %v1666_v29 = vrot.slane %v3793_v23, %v5055_v6  ;;  %v1682_v30 = vrot.slane %v3795_v24, %v5055_v6  ;;  %v1698_v31 = vrot.slane %v3797_v26, %v5055_v6  ;;  %v1714_v32 = vrot.slane %v3799_v27, %v5055_v6  ;;  %v3416_v27 = vld [vmem:[#allocation13 + $0x78] sm:$0xff] }
 0x46f   : > { %v2497_v33 = vmul.f32 %v4305_v28, %v5293_v52  ;;  %v3415_v28 = vld [vmem:[#allocation13 + $0x70] sm:$0xff]  ;;  %4129 = vmatpush3.msra.mxu0 %v3416_v27  ;;  %v3401_v27 = vld [vmem:[#allocation13] sm:$0xff] }
 0x470   : > { %v1731_v34 = vcombine.low %v1666_v29, %v1682_v30  ;;  %v1763_v35 = vcombine.low %v1698_v31, %v1714_v32  ;;  %v1732_v37 = vcombine.high %v1666_v29, %v1682_v30  ;;  %v1764_v54 = vcombine.high %v1698_v31, %v1714_v32  ;;  %4130 = vmatprep.subr.mxu0 %v4620_v0  ;;  %v3414_v31 = vld [vmem:[#allocation13 + $0x68] sm:$0xff] }
 0x471   : > { %v4307_v36 = vpop.eup %4306  ;;  %3528 = vst.msk [vmem:[%s5314_s3 + $0x20] sm:$0xff] %vm2415_vm3, %v2497_v33  ;;  %4131 = vmatpush3.msra.mxu0 %v3415_v28 }
 0x472   : > { %v1739_v39 = vrot.slane %v1731_v34, %v5059_v13  ;;  %v1771_v42 = vrot.slane %v1763_v35, %v5059_v13  ;;  %v2499_v50 = vmul.f32 %v4307_v36, %v5297_v5  ;;  %v1746_v43 = vrot.slane %v1732_v37, %v5059_v13  ;;  %4132 = vmatprep.subr.mxu0 %v4620_v0  ;;  %v3413_v36 = vld [vmem:[#allocation13 + $0x60] sm:$0xff]  ;;  %v3412_v37 = vld [vmem:[#allocation13 + $0x58] sm:$0xff] }
 0x473   : > { %v1778_v44 = vrot.slane %v1764_v54, %v5059_v13  ;;  %4133 = vmatpush3.msra.mxu0 %v3414_v31 }
 0x474   : > { %v1783_v11 = vcombine.low %v1739_v39, %v1771_v42  ;;  %3529 = vst.msk [vmem:[%s5314_s3 + $0x28] sm:$0xff] %vm2415_vm3, %v2499_v50  ;;  %v1784_v52 = vcombine.high %v1739_v39, %v1771_v42  ;;  %4134 = vmatprep.subr.mxu0 %v4620_v0  ;;  %v3411_v42 = vld [vmem:[#allocation13 + $0x50] sm:$0xff] }
 0x475   : > { %v1785_v55 = vcombine.low %v1746_v43, %v1778_v44  ;;  %4135 = vmatpush3.msra.mxu0 %v3413_v36 }
 0x476   : > { %v4309_v22 = vpop.eup %4308  ;;  %4109 = vmatpush3.msra.mxu1 %v1783_v11  ;;  %4136 = vmatprep.subr.mxu0 %v4620_v0  ;;  %v3409_v11 = vld [vmem:[#allocation13 + $0x40] sm:$0xff] }
 0x477   : > { %4111 = vmatmul.mubr.msk.f32.vlgmr.msra.gmra.mxu1 %vm2415_vm3, %v2497_v33  ;;  %4113 = vmatprep.subr.mxu1 %v4620_v0  ;;  %v2501_v51 = vmul.f32 %v4309_v22, %v5301_v17  ;;  %v1786_v17 = vcombine.high %v1746_v43, %v1778_v44  ;;  %v3408_v22 = vld [vmem:[#allocation13 + $0x38] sm:$0xff] }
 0x478   : > { %4114 = vmatpush3.msra.mxu1 %v1784_v52  ;;  %4115 = vmatprep.mubr.msk.f32.mxu1 %vm4621_vm0, %v4620_v0 }
 0x479   : > { %4118 = vmatprep.subr.mxu1 %v4620_v0  ;;  %3530 = vst.msk [vmem:[%s5314_s3 + $0x30] sm:$0xff] %vm2415_vm3, %v2501_v51  ;;  %4137 = vmatpush3.msra.mxu0 %v3412_v37 }
 0x47a   : > { %v4311_v5 = vpop.eup %4310  ;;  %4138 = vmatprep.subr.mxu0 %v4620_v0 }
 0x47b   : > { %4116 = vmatmul.mubr.msk.f32.vlgmr.msra.gmra.mxu1 %vm2415_vm3, %v2499_v50  ;;  %v2503_v46 = vmul.f32 %v4311_v5, %v5305_v40  ;;  %v3410_v50 = vld [vmem:[#allocation13 + $0x48] sm:$0xff]  ;;  %4139 = vmatpush3.msra.mxu0 %v3411_v42 }
 0x47c   : > { %4119 = vmatpush3.msra.mxu1 %v1785_v55  ;;  %4120 = vmatprep.mubr.msk.f32.mxu1 %vm4621_vm0, %v4620_v0 }
 0x47d   : > { %4123 = vmatprep.subr.mxu1 %v4620_v0  ;;  %3531 = vst.msk [vmem:[%s5314_s3 + $0x38] sm:$0xff] %vm2415_vm3, %v2503_v46  ;;  %4140 = vmatprep.subr.mxu0 %v4620_v0 }
 0x47e   : > { %4141 = vmatpush3.msra.mxu0 %v3410_v50 }
 0x47f   : > { %4121 = vmatmul.mubr.msk.f32.vlgmr.msra.gmra.mxu1 %vm2415_vm3, %v2501_v51  ;;  %4142 = vmatprep.subr.mxu0 %v4620_v0 }
 0x480   : > { %4124 = vmatpush3.msra.mxu1 %v1786_v17  ;;  %4125 = vmatprep.mubr.msk.f32.mxu1 %vm4621_vm0, %v4620_v0 }
 0x481   : > { %4143 = vmatpush3.msra.mxu0 %v3409_v11 }
 0x482   : > { %4144 = vmatprep.subr.mxu0 %v4620_v0 }
 0x483   : > { %4126 = vmatmul.mubr.msk.f32.vlgmr.msra.gmra.mxu1 %vm2415_vm3, %v2503_v46  ;;  %4145 = vmatpush3.msra.mxu0 %v3408_v22 }
 0x484   : > { %4146 = vmatprep.subr.mxu0 %v4620_v0 }
 0x4f2   : > { %v2573_v47 = vpop.f32.mrf.mxu1 }
 0x4f4   : > { %v4092_v48 = vpop.f32.mrf.mxu1 }
 0x4f7   : > { %v2646_v40 = vpop.f32.mrf.mxu1 }
 0x4f9   : > { %v4097_v49 = vpop.f32.mrf.mxu1 }
 0x4fb   : > { %v2719_v25 = vpop.f32.mrf.mxu1 }
 0x4fc   : > { %v3088_v38 = vcombine.low %v2573_v47, %v2719_v25  ;;  %v3089_v57 = vcombine.high %v2573_v47, %v2719_v25 }
 0x4fd   : > { %v4102_v56 = vpop.f32.mrf.mxu1 }
 0x4fe   : > { %v3096_v60 = vrot.slane %v3088_v38, %v5055_v6  ;;  %v3103_v61 = vrot.slane %v3089_v57, %v5055_v6 }
 0x4ff   : > { %v2792_v58 = vpop.f32.mrf.mxu1 }
 0x500   : > { %v3104_v41 = vcombine.low %v2646_v40, %v2792_v58  ;;  %v3105_v45 = vcombine.high %v2646_v40, %v2792_v58 }
 0x501   : > { %v4107_v59 = vpop.f32.mrf.mxu1 }
 0x502   : > { %v3112_v62 = vrot.slane %v3104_v41, %v5055_v6  ;;  %v3119_v63 = vrot.slane %v3105_v45, %v5055_v6 }
 0x504   : > { %v3152_v1 = vcombine.low %v3096_v60, %v3112_v62  ;;  %v3153_v2 = vcombine.high %v3096_v60, %v3112_v62  ;;  %v3168_v3 = vcombine.low %v3103_v61, %v3119_v63  ;;  %v3169_v53 = vcombine.high %v3103_v61, %v3119_v63  ;;  %v3407_v60 = vld [vmem:[#allocation13 + $0x30] sm:$0xff]  ;;  %v3406_v61 = vld [vmem:[#allocation13 + $0x28] sm:$0xff] }
 0x505   : > { %4147 = vmatpush3.msra.mxu0 %v3407_v60 }
 0x506   : > { %v3160_v4 = vrot.slane %v3152_v1, %v5059_v13  ;;  %v3167_v7 = vrot.slane %v3153_v2, %v5059_v13  ;;  %v3176_v8 = vrot.slane %v3168_v3, %v5059_v13  ;;  %v3183_v9 = vrot.slane %v3169_v53, %v5059_v13  ;;  %4148 = vmatprep.subr.mxu0 %v4620_v0 }
 0x507   : > { %4149 = vmatpush3.msra.mxu0 %v3406_v61 }
 0x508   : > { %v3824_v10 = vcombine.low %v3160_v4, %v3167_v7  ;;  %v3826_v12 = vcombine.high %v3160_v4, %v3167_v7  ;;  %v3828_v14 = vcombine.low %v3176_v8, %v3183_v9  ;;  %v3830_v15 = vcombine.high %v3176_v8, %v3183_v9  ;;  %4150 = vmatprep.subr.mxu0 %v4620_v0  ;;  %v3405_v8 = vld [vmem:[#allocation13 + $0x20] sm:$0xff]  ;;  %v3404_v9 = vld [vmem:[#allocation13 + $0x18] sm:$0xff] }
 0x509   : > { %4151 = vmatpush3.msra.mxu0 %v3405_v8 }
 0x50a   : > { %v3232_v16 = vrot.slane %v3824_v10, %v5055_v6  ;;  %v3248_v18 = vrot.slane %v3826_v12, %v5055_v6  ;;  %v3264_v19 = vrot.slane %v3828_v14, %v5055_v6  ;;  %v3280_v20 = vrot.slane %v3830_v15, %v5055_v6  ;;  %4152 = vmatprep.subr.mxu0 %v4620_v0 }
 0x50b   : > { %4153 = vmatpush3.msra.mxu0 %v3404_v9 }
 0x50c   : > { %v3288_v21 = vcombine.low %v3232_v16, %v3248_v18  ;;  %v3320_v23 = vcombine.low %v3264_v19, %v3280_v20  ;;  %v3289_v24 = vcombine.high %v3232_v16, %v3248_v18  ;;  %v3321_v26 = vcombine.high %v3264_v19, %v3280_v20  ;;  %4154 = vmatprep.subr.mxu0 %v4620_v0  ;;  %v3403_v19 = vld [vmem:[#allocation13 + $0x10] sm:$0xff]  ;;  %v3402_v20 = vld [vmem:[#allocation13 + $0x8] sm:$0xff] }
 0x50d   : > { %4155 = vmatpush3.msra.mxu0 %v3403_v19 }
 0x50e   : > { %v5395_v29 = vrot.slane %v3288_v21, %v5059_v13  ;;  %v5398_v30 = vrot.slane %v3320_v23, %v5059_v13  ;;  %v3303_v33 = vrot.slane %v3289_v24, %v5059_v13  ;;  %v3335_v34 = vrot.slane %v3321_v26, %v5059_v13  ;;  %4156 = vmatprep.subr.mxu0 %v4620_v0 }
 0x50f   : > { %4157 = vmatpush3.msra.mxu0 %v3402_v20 }
 0x510   : > { %v3353_v32 = vcombine.high %v5395_v29, %v5398_v30  ;;  %v3352_v35 = vcombine.low %v5395_v29, %v5398_v30  ;;  %v3354_v39 = vcombine.low %v3303_v33, %v3335_v34  ;;  %v3355_v54 = vcombine.high %v3303_v33, %v3335_v34  ;;  %4158 = vmatprep.subr.mxu0 %v4620_v0  ;;  %v3832_v29 = vld [vmem:[%s5537_s10] ss:$0 sm:$0xff] }
 0x511   : > { %4159 = vmatpush3.msra.mxu0 %v3401_v27 }
 0x512   : > { %3361 = vrot.lane.b32.xlu1 %v3353_v32, %s4628_s17 }
 0x516   : > { %3365 = vrot.lane.b32.xlu1 %v3354_v39, %s4627_s26 }
 0x51a   : > { %3369 = vrot.lane.b32.xlu1 %v3355_v54, %s4626_s27 }
 0x537   : > { %v2865_v52 = vpop.f32.mrf.mxu1 }
 0x539   : > { %v4112_v43 = vpop.f32.mrf.mxu1 }
 0x53b   : > { %v2938_v44 = vpop.f32.mrf.mxu1 }
 0x53d   : > { %v4117_v51 = vpop.f32.mrf.mxu1 }
 0x53f   : > { %v3011_v5 = vpop.f32.mrf.mxu1 }
 0x540   : > { %v3120_v46 = vcombine.low %v2865_v52, %v3011_v5  ;;  %v3121_v17 = vcombine.high %v2865_v52, %v3011_v5 }
 0x541   : > { %v4122_v55 = vpop.f32.mrf.mxu1 }
 0x542   : > { %v3128_v25 = vrot.slane %v3120_v46, %v5055_v6  ;;  %v3135_v56 = vrot.slane %v3121_v17, %v5055_v6  ;;  %v4314_v55 = vld [vmem:[%s529_s1] sm:$0xff]  ;;  %s3538_s1 = scalar_lea.sflag [#allocation16], %s4923_s0 }
 0x543   : > { %v3084_v47 = vpop.f32.mrf.mxu1 }
 0x544   : > { %v3136_v48 = vcombine.low %v2938_v44, %v3084_v47  ;;  %v3137_v40 = vcombine.high %v2938_v44, %v3084_v47 }
 0x545   : > { %v4127_v49 = vpop.f32.mrf.mxu1 }
 0x546   : > { %v3144_v38 = vrot.slane %v3136_v48, %v5055_v6  ;;  %v3151_v57 = vrot.slane %v3137_v40, %v5055_v6 }
 0x548   : > { %v3184_v58 = vcombine.low %v3128_v25, %v3144_v38  ;;  %v3185_v41 = vcombine.high %v3128_v25, %v3144_v38  ;;  %v3200_v45 = vcombine.low %v3135_v56, %v3151_v57  ;;  %v3201_v59 = vcombine.high %v3135_v56, %v3151_v57 }
 0x54a   : > { %v3192_v62 = vrot.slane %v3184_v58, %v5059_v13  ;;  %v3199_v63 = vrot.slane %v3185_v41, %v5059_v13  ;;  %v3208_v1 = vrot.slane %v3200_v45, %v5059_v13  ;;  %v3215_v2 = vrot.slane %v3201_v59, %v5059_v13 }
 0x54c   : > { %v3825_v3 = vcombine.low %v3192_v62, %v3199_v63  ;;  %v3827_v53 = vcombine.high %v3192_v62, %v3199_v63  ;;  %v3829_v4 = vcombine.low %v3208_v1, %v3215_v2  ;;  %v3831_v7 = vcombine.high %v3208_v1, %v3215_v2 }
 0x54e   : > { %v3239_v10 = vrot.slane %v3825_v3, %v5055_v6  ;;  %v3255_v12 = vrot.slane %v3827_v53, %v5055_v6  ;;  %v3271_v14 = vrot.slane %v3829_v4, %v5055_v6  ;;  %v3287_v15 = vrot.slane %v3831_v7, %v5055_v6 }
 0x550   : > { %v3304_v16 = vcombine.low %v3239_v10, %v3255_v12  ;;  %v3336_v18 = vcombine.low %v3271_v14, %v3287_v15  ;;  %v3305_v26 = vcombine.high %v3239_v10, %v3255_v12  ;;  %v3337_v6 = vcombine.high %v3271_v14, %v3287_v15 }
 0x552   : > { %v3312_v21 = vrot.slane %v3304_v16, %v5059_v13  ;;  %v3344_v23 = vrot.slane %v3336_v18, %v5059_v13  ;;  %v3319_v31 = vrot.slane %v3305_v26, %v5059_v13  ;;  %v3351_v32 = vrot.slane %v3337_v6, %v5059_v13 }
 0x554   : > { %v3356_v24 = vcombine.low %v3312_v21, %v3344_v23  ;;  %v3357_v28 = vcombine.high %v3312_v21, %v3344_v23  ;;  %v3358_v33 = vcombine.low %v3319_v31, %v3351_v32  ;;  %v3359_v34 = vcombine.high %v3319_v31, %v3351_v32 }
 0x556   : > { %3373 = vrot.lane.b32.xlu1 %v3356_v24, %s4625_s23  ;;  %s4631_s23 = smov [#allocation15]  }
 0x557   : > { %s4507_s27 = sshll.u32 %s4631_s23, 4  ;;  %s4508_s27 = int_to_ptr.vmem [resolvable:$false] %s4507_s27 }
 0x558   : > { %s4509_s26 = scalar_lea.vmem %s4508_s27, 2048  ;;  %p4510_p11 = scmp.lt.s32.totalorder %s5460_s14, %s4508_s27 }
 0x55a   : > { %3377 = vrot.lane.b32.xlu1 %v3357_v28, %s4622_s7  ;;  %s5604_s7 = sld [smem:[#allocation36_spill]] }
 0x55e   : > { %3381 = vrot.lane.b32.xlu1 %v3358_v33, %s4624_s11  ;;  %s4503_s11 = scalar_lea.vmem %s5460_s14, 1024 }
 0x55f   : > { %p4504_p5 = scmp.ne.s32.totalorder %s5460_s14, %s4503_s11  ;;  %p4511_p0 = scmp.lt.s32.totalorder %s4509_s26, %s4503_s11 }
 0x561   : > { %p4505_p8 = pnand %p4504_p5, %p5605_p1  ;;  %p4512_p4 = por %p4511_p0, %p4510_p11 }
 0x562   : > { %3385 = vrot.lane.b32.xlu1 %v3359_v34, %s4623_s21  ;;  %s5458_s21 = scalar_lea.hbm %s5604_s7, %s3842_s24 }
 0x563   : > { %p4506_p10 = pneg %p4505_p8 }
 0x565   : > { %p4513_p7 = pnand %p4512_p4, %p4506_p10 }
 0x584   : > { %v3362_v36 = vpop.permute.xlu1 %3361 }
 0x585   : > { %v3388_v13 = vsel %vm1787_vm1, %v3352_v35, %v3362_v36 }
 0x588   : > { %v3366_v37 = vpop.permute.xlu1 %3365 }
 0x589   : > { %v3390_v50 = vsel %vm3389_vm4, %v3388_v13, %v3366_v37 }
 0x58c   : > { %v3370_v0 = vpop.permute.xlu1 %3369 }
 0x58d   : > { %v3392_v11 = vsel %vm3391_vm5, %v3390_v50, %v3370_v0 }
 0x5c8   : > { %v3374_v39 = vpop.permute.xlu1 %3373 }
 0x5c9   : > { %v3394_v22 = vsel %vm3393_vm6, %v3392_v11, %v3374_v39 }
 0x5cc   : > { %v3378_v42 = vpop.permute.xlu1 %3377 }
 0x5cd   : > { %v3396_v52 = vsel %vm3395_vm7, %v3394_v22, %v3378_v42 }
 0x5d0   : > { %v3382_v54 = vpop.permute.xlu1 %3381 }
 0x5d1   : > { %v3398_v43 = vsel %vm3397_vm8, %v3396_v52, %v3382_v54 }
 0x5d4   : > { %v3386_v44 = vpop.permute.xlu1 %3385 }
 0x5d5   : > { %v3400_v51 = vsel %vm3399_vm9, %v3398_v43, %v3386_v44 }
 0x5d6   : > { %4161 = vmatmul.mubr.f32.vlgmr.msra.gmra.mxu0 %v3400_v51 }
 0x696   : > { %v3490_v30 = vpop.f32.mrf.mxu0 }
 0x697   : > { %v3491_v35 = vadd.f32 %v3832_v29, %v3490_v30 }
 0x698   : > { %v4162_v5 = vpop.f32.mrf.mxu0 }
 0x699   : > { %v3494_v46 = vadd.f32 %v4314_v55, %v3491_v35 }
 0x69b   : > { %3495 = vadd.xlane.f32.xlu1 %v3494_v46 }
 0x724   : > { %v3496_v17 = vpop.xlane.xlu1 %3495 }
 0x725   : > { %v3498_v47 = vmul.f32 0.0078125, %v3496_v17 }
 0x727   : > { %v3499_v48 = vsub.f32 %v3494_v46, %v3498_v47 }
 0x729   : > { %v3500_v40 = vmul.f32 %v3499_v48, %v3499_v48 }
 0x72b   : > { %3501 = vadd.xlane.f32.xlu0 %v3500_v40 }
 0x72c   : > { %4516 = shalt.err (!%p4513_p7)
}
 0x72d   : > { %s4517_s17 = scalar_lea.hbm %s5458_s21, 1024  ;;  %s4521_s18 = scalar_lea.hbm %s5604_s7, 2048 }
 0x72e   : > { %p4518_p3 = scmp.ne.s32.totalorder %s5458_s21, %s4517_s17  ;;  %p4522_p6 = scmp.lt.s32.totalorder %s5458_s21, %s5604_s7 }
 0x72f   : > { %p4523_p9 = scmp.lt.s32.totalorder %s4521_s18, %s4517_s17 }
 0x730   : > { %p4519_p12 = pnand %p4518_p3, %p5605_p1 }
 0x731   : > { %p4524_p2 = por %p4523_p9, %p4522_p6 }
 0x732   : > { %p4520_p13 = pneg %p4519_p12 }
 0x734   : > { %p4525_p5 = pnand %p4524_p2, %p4520_p13 }
 0x736   : > { %4528 = shalt.err (!%p4525_p5)
}
 0x737   : > { %s4632_s20 = smov 128   ;;  %s4633_s24 = smov 8  }
 0x738   : > { %4186 = dma.vmem_to_hbm [thread:$0]  (%p5605_p1), %s5460_s14, 1024, %s5458_s21, %s3538_s1, %s4632_s20, %s4632_s20, %s4633_s24  }
 0x739   : > { %s5606_s11 = sld [smem:[#allocation33_spill]]  ;;  %s3837_s17 = sshll.u32 %s4731_s19, 7 }
 0x73a   : > { %s5607_s26 = sld [smem:[#allocation34_spill]]  ;;  %s615_s22 = scalar_lea.vmem [#allocation14], %s4926_s16 }
 0x73b   : > { %s3551_s29 = sshll.u32 %s615_s22, 4  ;;  %s5608_s1 = sld [smem:[#allocation35_spill]]  ;;  %s3552_s29 = int_to_ptr.vmem [resolvable:$true] %s3551_s29 }
 0x73c   : > { %s3533_s3 = scalar_lea.sflag [#allocation4], %s4923_s0  ;;  %s4529_s12 = scalar_lea.vmem %s3552_s29, 128 }
 0x73d   : > { %p4530_p8 = scmp.ne.s32.totalorder %s3552_s29, %s4529_s12  ;;  %s4634_s20 = smov [#allocation14]  }
 0x73e   : > { %s4533_s24 = sshll.u32 %s4634_s20, 4  ;;  %s4534_s24 = int_to_ptr.vmem [resolvable:$false] %s4533_s24 }
 0x73f   : > { %v3833_v57 = vld [vmem:[%s5606_s11] ss:$0 sm:$0xff]  ;;  %p4531_p10 = pnand %p4530_p8, %p5605_p1  ;;  %s4535_s19 = scalar_lea.vmem %s4534_s24, 256 }
 0x740   : > { %v3834_v41 = vld [vmem:[%s5607_s26] ss:$0 sm:$0xff]  ;;  %p4536_p0 = scmp.lt.s32.totalorder %s3552_s29, %s4534_s24  ;;  %p4537_p4 = scmp.lt.s32.totalorder %s4535_s19, %s4529_s12 }
 0x741   : > { %s3549_s18 = scalar_lea.hbm %s5608_s1, %s3837_s17  ;;  %p4532_p11 = pneg %p4531_p10 }
 0x742   : > { %p4538_p7 = por %p4537_p4, %p4536_p0 }
 0x744   : > { %p4539_p3 = pnand %p4538_p7, %p4532_p11 }
 0x7b4   : > { %v3502_v49 = vpop.xlane.xlu0 %3501 }
 0x7b5   : > { %v3503_v25 = vmul.f32 0.0078125, %v3502_v49 }
 0x7b7   : > { %v3504_v56 = vadd.f32 1e-05, %v3503_v25 }
 0x7b9   : > { %4312 = vrsqrt.f32 %v3504_v56 }
 0x7c6   : > { %v4313_v38 = vpop.eup %4312 }
 0x7c7   : > { %v3506_v58 = vmul.f32 %v4313_v38, %v3499_v48 }
 0x7c9   : > { %v3514_v45 = vmul.f32 %v3833_v57, %v3506_v58 }
 0x7cb   : > { %v3522_v59 = vadd.f32 %v3834_v41, %v3514_v45 }
 0x7cd   : > { %3523 = vst [vmem:[%s615_s22] sm:$0xff] %v3522_v59 }
 0x7ce   : > { %4542 = shalt.err (!%p4539_p3)
}
 0x7cf   : > { %s4543_s16 = scalar_lea.hbm %s3549_s18, 128  ;;  %s4547_s28 = scalar_lea.hbm %s5608_s1, 256 }
 0x7d0   : > { %p4544_p12 = scmp.ne.s32.totalorder %s3549_s18, %s4543_s16  ;;  %p4548_p9 = scmp.lt.s32.totalorder %s3549_s18, %s5608_s1 }
 0x7d1   : > { %p4549_p2 = scmp.lt.s32.totalorder %s4547_s28, %s4543_s16 }
 0x7d2   : > { %p4545_p13 = pnand %p4544_p12, %p5605_p1 }
 0x7d3   : > { %p4550_p5 = por %p4549_p2, %p4548_p9 }
 0x7d4   : > { %p4546_p6 = pneg %p4545_p13 }
 0x7d6   : > { %p4551_p8 = pnand %p4550_p5, %p4546_p6 }
 0x7d8   : > { %4554 = shalt.err (!%p4551_p8)
}
 0x7d9   : > { %4185 = dma.vmem_to_hbm [thread:$0]  (%p5605_p1), %s3552_s29, 128, %s3549_s18, %s3533_s3  }
 0x7da PF: > { %s5609_s27 = sld [smem:[#allocation23_spill]] }
 0x7db   : > { %s5610_s26 = sld [smem:[#allocation28_spill]] }
 0x7dc   : > { %s5611_s17 = sld [smem:[#allocation24_spill]] }
 0x7e0   : > { %s3579_s22 = sand.u32 1, %s5609_s27  }
 0x7e1   : > { %p5612_p10 = scmp.ne.s32.totalorder %s5610_s26, 0  ;;  %s3580_s14 = scalar_lea.sflag [#allocation4], %s3579_s22 }
 0x7e2   : > { %p5613_p11 = scmp.ge.s32.totalorder %s5611_s17, 2 }
 0x7e4   : > { %p4213_p0 = pnand %p5613_p11, %p5612_p10 }
 0x7e6   : > { %p4214_p4 = pneg %p4213_p0 }
 0x7e8   : > { %4588 = dma.done.wait (%p4214_p4), %s3580_s14, 128  }
 0x7e9   : > { %4590 = vsyncadd (%p4214_p4), %s3580_s14, 4294967168  ;;  %s3589_s21 = scalar_lea.sflag [#allocation16], %s3579_s22 }
 0x7ea   : > { %4592 = dma.done.wait (%p4214_p4), %s3589_s21, 1024  }
 0x7eb   : > { %4594 = vsyncadd (%p4214_p4), %s3589_s21, 4294966272  ;;  %s5614_s16 = sld [smem:[#allocation25_spill]]  ;;  %s5616_s29 = smov %s4601_s30 }
 0x7ec   : > { %s5615_s13 = sld [smem:[#allocation26_spill]]  ;;  %s5617_s30 = smov %s4605_s15 }
 0x7f1   : > { %p36_p1 = scmp.ge.s32.totalorder %s5614_s16, 4  }
 0x7f2   : > { %s5618_s15 = smov %s5615_s13 }
 0x7f3   :  { %38 = sbr.rel (!%p36_p1) target bundleno = 20 (0x14), region = 174 }
 0x7f8   :  { %3594 = vsyncpa [#allocation3], 1 }
 0x7f9   :  { %3596 = vsyncpa [#allocation3 + $0x1], 1 }
 0x7fa   :  { %3597 = vsyncpa [#allocation6], 1 }
 0x7fb   :  { %3599 = vsyncpa [#allocation6 + $0x1], 1 }
 0x7fc   :  { %3600 = vsyncpa [#allocation9], 1 }
 0x7fd   :  { %3601 = vsyncpa [#allocation12], 1 }
 0x7fe   :  { %3602 = vsyncpa [#allocation4], 1 }
 0x7ff   :  { %3604 = vsyncpa [#allocation4 + $0x1], 1 }
 0x800   :  { %3605 = vsyncpa [#allocation16], 1 }
 0x801   :  { %3607 = vsyncpa [#allocation16 + $0x1], 1 }

</bundles_post_ra>
